<compile_context>
chip_gen: v5e
topology: v5e:2x2
jax: 0.10.0
libtpu: 0.0.40
codegen_flags: <defaults>
</compile_context>

<pallas_src>
import functools
import math

import jax
import jax.numpy as jnp
from jax import lax
from jax.experimental import pallas as pl
from jax.experimental.pallas import tpu as pltpu


# ----------------------------- shared math --------------------------------- #

def _layernorm(x, gamma, beta, eps=1e-5):
    mu = jnp.mean(x, axis=-1, keepdims=True)
    var = jnp.mean((x - mu) ** 2, axis=-1, keepdims=True)
    return (x - mu) * jax.lax.rsqrt(var + eps) * gamma + beta


# ------------------------------- kernel ------------------------------------ #

def encoder_kernel(x_ref, pe_ref,
                   wqkv_ref, bqkv_ref, wo_ref, vecs_ref,
                   w1_ref, bf1_ref, w2_ref,
                   o_ref, act_ref, *, num_heads, block_b, seq_len):
    layer = pl.program_id(1)
    last_layer = pl.num_programs(1) - 1

    # Layer 0: load this batch block and add the positional encoding; the
    # (Bb*T, E) activation then lives in VMEM (act_ref) for the whole layer axis.
    @pl.when(layer == 0)
    def _():
        act_ref[...] = x_ref[...].astype(jnp.float32) + pe_ref[...]

    x2d = act_ref[...]                                   # (Bb*T, E) f32
    E = x2d.shape[1]
    H = num_heads
    dh = E // H
    T = seq_len
    Bb = block_b

    xb = x2d.astype(jnp.bfloat16)

    # ---- fused Q/K/V projection: one full-width (Bb*T, E) @ (E, 3E) matmul ----
    # wqkv columns are [ wq*scale | wk | wv ]; scale folded at pack time.
    qkv = jnp.dot(xb, wqkv_ref[0],
                  preferred_element_type=jnp.float32) + bqkv_ref[0]   # (Bb*T, 3E)

    # ---- scaled dot-product attention, per (batch row, head) ----------------
    # Only a single (T, T) score tile is live at a time; per-head context tiles
    # are lane-concatenated so the output projection is one (E, E) matmul.
    ctx_rows = []
    for b in range(Bb):
        r0 = b * T
        head_ctx = []
        for h in range(H):
            q = qkv[r0:r0 + T, h * dh:(h + 1) * dh].astype(jnp.bfloat16)
            k = qkv[r0:r0 + T, E + h * dh:E + (h + 1) * dh].astype(jnp.bfloat16)
            v = qkv[r0:r0 + T, 2 * E + h * dh:2 * E + (h + 1) * dh].astype(jnp.bfloat16)

            # s = q @ k^T without materializing a transpose (NT dot_general).
            s = lax.dot_general(q, k, (((1,), (1,)), ((), ())),
                                preferred_element_type=jnp.float32)   # (T, T)
            s = s - jnp.max(s, axis=-1, keepdims=True)
            p = jnp.exp(s)
            inv_l = pl.reciprocal(jnp.sum(p, axis=-1, keepdims=True), approx=True)
            c = jnp.dot(p.astype(jnp.bfloat16), v,
                        preferred_element_type=jnp.float32) * inv_l   # (T, dh)
            head_ctx.append(c)
        ctx_rows.append(jnp.concatenate(head_ctx, axis=1))            # (T, E)
    ctx = ctx_rows[0] if Bb == 1 else jnp.concatenate(ctx_rows, axis=0)  # (Bb*T, E)

    vecs = vecs_ref[0]                                                # (8, E) f32
    bo, g1, b1 = vecs[0:1], vecs[1:2], vecs[2:3]
    bf2, g2, b2 = vecs[3:4], vecs[4:5], vecs[5:6]

    # ---- output projection: single (E, E) matmul on merged heads ------------
    attn_out = jnp.dot(ctx.astype(jnp.bfloat16), wo_ref[0],
                       preferred_element_type=jnp.float32) + bo       # (Bb*T, E)

    y1 = _layernorm(x2d + attn_out, g1, b1)

    # ---- feed-forward --------------------------------------------------------
    h1 = jnp.dot(y1.astype(jnp.bfloat16), w1_ref[0],
                 preferred_element_type=jnp.float32) + bf1_ref[0]
    h1 = jnp.maximum(h1, 0.0)
    h2 = jnp.dot(h1.astype(jnp.bfloat16), w2_ref[0],
                 preferred_element_type=jnp.float32) + bf2

    out = _layernorm(y1 + h2, g2, b2)
    act_ref[...] = out                                                # stays resident

    @pl.when(layer == last_layer)
    def _():
        o_ref[...] = out.astype(o_ref.dtype)                          # one lane-dense store


# ------------------------------- wrapper ------------------------------------ #

def transformer_encoder(x, pe, packed, num_heads, block_b=None):
    B, T, E = x.shape
    L = packed['wqkv'].shape[0]
    d_ff = packed['w1'].shape[-1]
    assert E % num_heads == 0

    if block_b is None:
        block_b = 2 if B % 2 == 0 else 1     # Bb>1 => Bb x weight reuse + bigger M
    assert B % block_b == 0
    Bb = block_b

    x2d = x.reshape(B * T, E)                # lane-dense 2D activation slab
    pe_tiled = jnp.tile(pe, (Bb, 1))         # (Bb*T, E), fetched once

    in_specs = [
        pl.BlockSpec((Bb * T, E), lambda b, l: (b, 0)),            # x (once per batch block)
        pl.BlockSpec((Bb * T, E), lambda b, l: (0, 0)),            # pe (once)
        pl.BlockSpec((1, E, 3 * E), lambda b, l: (l, 0, 0)),       # wqkv (bf16, scale folded)
        pl.BlockSpec((1, 1, 3 * E), lambda b, l: (l, 0, 0)),       # bqkv
        pl.BlockSpec((1, E, E), lambda b, l: (l, 0, 0)),           # wo (bf16)
        pl.BlockSpec((1, 8, E), lambda b, l: (l, 0, 0)),           # packed bias/LN vecs
        pl.BlockSpec((1, E, d_ff), lambda b, l: (l, 0, 0)),        # w1 (bf16)
        pl.BlockSpec((1, 1, d_ff), lambda b, l: (l, 0, 0)),        # bf1
        pl.BlockSpec((1, d_ff, E), lambda b, l: (l, 0, 0)),        # w2 (bf16)
    ]

    out2d = pl.pallas_call(
        functools.partial(encoder_kernel, num_heads=num_heads,
                          block_b=Bb, seq_len=T),
        out_shape=jax.ShapeDtypeStruct((B * T, E), x.dtype),
        grid=(B // Bb, L),
        in_specs=in_specs,
        out_specs=pl.BlockSpec((Bb * T, E), lambda b, l: (b, 0)),
        scratch_shapes=[pltpu.VMEM((Bb * T, E), jnp.float32)],     # resident activation
        compiler_params=pltpu.CompilerParams(
            dimension_semantics=("parallel", "arbitrary"),
            # 48 MiB fits v7x's 64 MiB/TC; raise toward 96 MiB on v5e/v6e for
            # larger batch blocks / deeper weight buffering.
            vmem_limit_bytes=48 * 1024 * 1024),
    )(x2d, pe_tiled, packed['wqkv'], packed['bqkv'], packed['wo'], packed['vecs'],
      packed['w1'], packed['bf1'], packed['w2'])
    return out2d.reshape(B, T, E)


# --------------------------- param setup / packing -------------------------- #

def sinusoidal_pe(max_len, d_model):
    position = jnp.arange(max_len, dtype=jnp.float32)[:, None]
    div_term = jnp.exp(jnp.arange(0, d_model, 2, dtype=jnp.float32)
                       * -(math.log(10000.0) / d_model))
    pe = jnp.zeros((max_len, d_model), dtype=jnp.float32)
    pe = pe.at[:, 0::2].set(jnp.sin(position * div_term))
    pe = pe.at[:, 1::2].set(jnp.cos(position * div_term))
    return pe


def init_layer_params(key, d_model, d_ff):
    ks = jax.random.split(key, 6)
    s = 0.02
    return {
        "wq": jax.random.normal(ks[0], (d_model, d_model), jnp.float32) * s,
        "bq": jnp.zeros((1, d_model), jnp.float32),
        "wk": jax.random.normal(ks[1], (d_model, d_model), jnp.float32) * s,
        "bk": jnp.zeros((1, d_model), jnp.float32),
        "wv": jax.random.normal(ks[2], (d_model, d_model), jnp.float32) * s,
        "bv": jnp.zeros((1, d_model), jnp.float32),
        "wo": jax.random.normal(ks[3], (d_model, d_model), jnp.float32) * s,
        "bo": jnp.zeros((1, d_model), jnp.float32),
        "g1": jnp.ones((1, d_model), jnp.float32),
        "b1": jnp.zeros((1, d_model), jnp.float32),
        "w1": jax.random.normal(ks[4], (d_model, d_ff), jnp.float32) * s,
        "bf1": jnp.zeros((1, d_ff), jnp.float32),
        "w2": jax.random.normal(ks[5], (d_ff, d_model), jnp.float32) * s,
        "bf2": jnp.zeros((1, d_model), jnp.float32),
        "g2": jnp.ones((1, d_model), jnp.float32),
        "b2": jnp.zeros((1, d_model), jnp.float32),
    }


def pack_params(layer_params, num_heads):
    """Stack per-layer params with a leading layer axis.  QKV weights/biases are
    lane-concatenated to (E, 3E)/(1, 3E) with the 1/sqrt(dh) attention scale
    folded into the q columns; bias/LN vectors packed; matmul weights bf16."""
    H = num_heads

    def per_layer(p):
        E = p['wq'].shape[0]
        dh = E // H
        scale = 1.0 / math.sqrt(dh)
        wqkv = jnp.concatenate([p['wq'] * scale, p['wk'], p['wv']], axis=1)  # (E, 3E)
        bqkv = jnp.concatenate([p['bq'] * scale, p['bk'], p['bv']], axis=1)  # (1, 3E)
        vecs = jnp.zeros((8, E), jnp.float32)
        vecs = vecs.at[:6].set(jnp.concatenate(
            [p['bo'], p['g1'], p['b1'], p['bf2'], p['g2'], p['b2']], axis=0))
        return dict(wqkv=wqkv, bqkv=bqkv, wo=p['wo'], vecs=vecs,
                    w1=p['w1'], bf1=p['bf1'], w2=p['w2'])

    per = [per_layer(p) for p in layer_params]
    stack = lambda k: jnp.stack([q[k] for q in per], axis=0)
    return {
        'wqkv': stack('wqkv').astype(jnp.bfloat16),
        'bqkv': stack('bqkv'),
        'wo':   stack('wo').astype(jnp.bfloat16),
        'vecs': stack('vecs'),
        'w1':   stack('w1').astype(jnp.bfloat16),
        'bf1':  stack('bf1'),
        'w2':   stack('w2').astype(jnp.bfloat16),
    }


# ---------------------------- pure-JAX reference ----------------------------- #

def reference_encoder(x, pe, layer_params, num_heads):
    x = x + pe[None]
    for p in layer_params:
        B, T, E = x.shape
        H = num_heads
        dh = E // H
        q = x @ p['wq'] + p['bq']
        k = x @ p['wk'] + p['bk']
        v = x @ p['wv'] + p['bv']

        def heads(t):
            return jnp.transpose(t.reshape(B, T, H, dh), (0, 2, 1, 3))

        qh, kh, vh = heads(q), heads(k), heads(v)
        s = jnp.einsum('bhqd,bhkd->bhqk', qh, kh) / math.sqrt(dh)
        pa = jax.nn.softmax(s, axis=-1)
        ctx = jnp.einsum('bhqk,bhkd->bhqd', pa, vh)
        ctx = jnp.transpose(ctx, (0, 2, 1, 3)).reshape(B, T, E)
        attn = ctx @ p['wo'] + p['bo']
        y1 = _layernorm(x + attn, p['g1'], p['b1'])
        h = jnp.maximum(y1 @ p['w1'] + p['bf1'], 0.0)
        ffn = h @ p['w2'] + p['bf2']
        x = _layernorm(y1 + ffn, p['g2'], p['b2'])
    return x


# ----------------------------------- main ------------------------------------ #

if __name__ == "__main__":
    B, T, E = 4, 8, 32          # batch, sequence length, embed dim
    NUM_HEADS = 4
    D_FF = 64
    NUM_LAYERS = 2

    key = jax.random.PRNGKey(0)
    kx, *kl = jax.random.split(key, 1 + NUM_LAYERS)

    src = jax.random.normal(kx, (B, T, E), dtype=jnp.float32)
    pe = sinusoidal_pe(T, E)
    layer_params = [init_layer_params(k, E, D_FF) for k in kl]
    packed = pack_params(layer_params, NUM_HEADS)

    out = transformer_encoder(src, pe, packed, NUM_HEADS, block_b=2)
    out = jax.block_until_ready(out)

    assert out.shape == (B, T, E) and out.dtype == jnp.float32
    assert bool(jnp.all(jnp.isfinite(out)))

    ref = reference_encoder(src, pe, layer_params, NUM_HEADS)
    assert jnp.allclose(out, ref, atol=5e-2, rtol=5e-2), \
        float(jnp.max(jnp.abs(out - ref)))

    print("KERNEL_OK")
</pallas_src>

<mosaic_0001>
module attributes {stable_mosaic.version = 11 : i64} {
  func.func @encoder_kernel(%arg0: i32, %arg1: i32, %arg2: memref<16x32xf32, #tpu.memory_space<vmem>>, %arg3: memref<16x32xf32, #tpu.memory_space<vmem>>, %arg4: memref<1x32x96xbf16, #tpu.memory_space<vmem>>, %arg5: memref<1x1x96xf32, #tpu.memory_space<vmem>>, %arg6: memref<1x32x32xbf16, #tpu.memory_space<vmem>>, %arg7: memref<1x8x32xf32, #tpu.memory_space<vmem>>, %arg8: memref<1x32x64xbf16, #tpu.memory_space<vmem>>, %arg9: memref<1x1x64xf32, #tpu.memory_space<vmem>>, %arg10: memref<1x64x32xbf16, #tpu.memory_space<vmem>>, %arg11: memref<16x32xf32, #tpu.memory_space<vmem>>, %arg12: memref<16x32xf32, #tpu.memory_space<vmem>>) attributes {dimension_semantics = [#tpu.dimension_semantics<parallel>, #tpu.dimension_semantics<arbitrary>], iteration_bounds = array<i64: 2, 2>, scalar_prefetch = 0 : i64, scratch_operands = 1 : i64, tpu.core_type = #tpu.core_type<tc>, window_params = [{transform_indices = @transform_0, window_bounds = array<i64: 16, 32>}, {pipeline_mode = #tpu.pipeline_mode<synchronous>, transform_indices = @transform_1, window_bounds = array<i64: 16, 32>}, {transform_indices = @transform_2, window_bounds = array<i64: 1, 32, 96>}, {transform_indices = @transform_3, window_bounds = array<i64: 1, 1, 96>}, {transform_indices = @transform_4, window_bounds = array<i64: 1, 32, 32>}, {transform_indices = @transform_5, window_bounds = array<i64: 1, 8, 32>}, {transform_indices = @transform_6, window_bounds = array<i64: 1, 32, 64>}, {transform_indices = @transform_7, window_bounds = array<i64: 1, 1, 64>}, {transform_indices = @transform_8, window_bounds = array<i64: 1, 64, 32>}, {transform_indices = @transform_9, window_bounds = array<i64: 16, 32>}]} {
    %c0_i32 = arith.constant 0 : i32
    %0 = arith.cmpi eq, %arg1, %c0_i32 : i32
    %1 = arith.extui %0 : i1 to i32
    %c0_i32_0 = arith.constant 0 : i32
    %2 = arith.cmpi ne, %1, %c0_i32_0 : i32
    scf.if %2 {
      %c0_72 = arith.constant 0 : index
      %c0_73 = arith.constant 0 : index
      %247 = vector.load %arg2[%c0_72, %c0_73] : memref<16x32xf32, #tpu.memory_space<vmem>>, vector<16x32xf32>
      %c0_74 = arith.constant 0 : index
      %c0_75 = arith.constant 0 : index
      %248 = vector.load %arg3[%c0_74, %c0_75] : memref<16x32xf32, #tpu.memory_space<vmem>>, vector<16x32xf32>
      %249 = arith.addf %247, %248 : vector<16x32xf32>
      %c0_76 = arith.constant 0 : index
      %c0_77 = arith.constant 0 : index
      %250 = vector.load %arg12[%c0_76, %c0_77] : memref<16x32xf32, #tpu.memory_space<vmem>>, vector<16x32xf32>
      tpu.vector_store %arg12[%c0_76, %c0_77], %249 {strides = array<i32>} : memref<16x32xf32, #tpu.memory_space<vmem>>, vector<16x32xf32>,
    } else {
    }
    %c0 = arith.constant 0 : index
    %c0_1 = arith.constant 0 : index
    %3 = vector.load %arg12[%c0, %c0_1] : memref<16x32xf32, #tpu.memory_space<vmem>>, vector<16x32xf32>
    %4 = arith.truncf %3 : vector<16x32xf32> to vector<16x32xbf16>
    %c0_2 = arith.constant 0 : index
    %c0_3 = arith.constant 0 : index
    %c0_4 = arith.constant 0 : index
    %5 = vector.load %arg4[%c0_2, %c0_3, %c0_4] : memref<1x32x96xbf16, #tpu.memory_space<vmem>>, vector<1x32x96xbf16>
    %6 = vector.shape_cast %5 : vector<1x32x96xbf16> to vector<32x96xbf16>
    %cst = arith.constant dense<0.000000e+00> : vector<16x96xf32>
    %7 = tpu.matmul %4, %6, %cst {dimension_numbers = #tpu.dot_dimension_numbers<[1], [0], [0], [1], [0, 0, 1, 1], [], []>} : vector<16x32xbf16>, vector<32x96xbf16>, vector<16x96xf32> -> vector<16x96xf32>
    %c0_5 = arith.constant 0 : index
    %c0_6 = arith.constant 0 : index
    %c0_7 = arith.constant 0 : index
    %8 = vector.load %arg5[%c0_5, %c0_6, %c0_7] : memref<1x1x96xf32, #tpu.memory_space<vmem>>, vector<1x1x96xf32>
    %9 = vector.shape_cast %8 : vector<1x1x96xf32> to vector<1x96xf32>
    %10 = vector.broadcast %9 : vector<1x96xf32> to vector<16x96xf32>
    %11 = arith.addf %7, %10 : vector<16x96xf32>
    %12 = vector.extract_strided_slice %11 {offsets = [0, 0], sizes = [8, 8], strides = [1, 1]} : vector<16x96xf32> to vector<8x8xf32>
    %13 = arith.truncf %12 : vector<8x8xf32> to vector<8x8xbf16>
    %14 = vector.extract_strided_slice %11 {offsets = [0, 32], sizes = [8, 8], strides = [1, 1]} : vector<16x96xf32> to vector<8x8xf32>
    %15 = arith.truncf %14 : vector<8x8xf32> to vector<8x8xbf16>
    %16 = vector.extract_strided_slice %11 {offsets = [0, 64], sizes = [8, 8], strides = [1, 1]} : vector<16x96xf32> to vector<8x8xf32>
    %17 = arith.truncf %16 : vector<8x8xf32> to vector<8x8xbf16>
    %cst_8 = arith.constant dense<0.000000e+00> : vector<8x8xf32>
    %18 = tpu.matmul %13, %15, %cst_8 {dimension_numbers = #tpu.dot_dimension_numbers<[1], [1], [0], [0], [0, 0, 1, 0], [], []>} : vector<8x8xbf16>, vector<8x8xbf16>, vector<8x8xf32> -> vector<8x8xf32>
    %cst_9 = arith.constant dense<0xFF800000> : vector<8xf32>
    %19 = vector.multi_reduction <maximumf>, %18, %cst_9 [1] : vector<8x8xf32> to vector<8xf32>
    %20 = vector.shape_cast %19 : vector<8xf32> to vector<8x1xf32>
    %21 = vector.broadcast %20 : vector<8x1xf32> to vector<8x8xf32>
    %22 = arith.subf %18, %21 : vector<8x8xf32>
    %23 = math.exp %22 : vector<8x8xf32>
    %cst_10 = arith.constant dense<0.000000e+00> : vector<8xf32>
    %24 = vector.multi_reduction <add>, %23, %cst_10 [1] : vector<8x8xf32> to vector<8xf32>
    %25 = vector.shape_cast %24 : vector<8xf32> to vector<8x1xf32>
    %26 = tpu.reciprocal %25 {approx = true} : vector<8x1xf32> -> vector<8x1xf32>
    %27 = arith.truncf %23 : vector<8x8xf32> to vector<8x8xbf16>
    %cst_11 = arith.constant dense<0.000000e+00> : vector<8x8xf32>
    %28 = tpu.matmul %27, %17, %cst_11 {dimension_numbers = #tpu.dot_dimension_numbers<[1], [0], [0], [1], [0, 0, 1, 1], [], []>} : vector<8x8xbf16>, vector<8x8xbf16>, vector<8x8xf32> -> vector<8x8xf32>
    %29 = vector.broadcast %26 : vector<8x1xf32> to vector<8x8xf32>
    %30 = arith.mulf %28, %29 : vector<8x8xf32>
    %31 = vector.extract_strided_slice %11 {offsets = [0, 8], sizes = [8, 8], strides = [1, 1]} : vector<16x96xf32> to vector<8x8xf32>
    %32 = arith.truncf %31 : vector<8x8xf32> to vector<8x8xbf16>
    %33 = vector.extract_strided_slice %11 {offsets = [0, 40], sizes = [8, 8], strides = [1, 1]} : vector<16x96xf32> to vector<8x8xf32>
    %34 = arith.truncf %33 : vector<8x8xf32> to vector<8x8xbf16>
    %35 = vector.extract_strided_slice %11 {offsets = [0, 72], sizes = [8, 8], strides = [1, 1]} : vector<16x96xf32> to vector<8x8xf32>
    %36 = arith.truncf %35 : vector<8x8xf32> to vector<8x8xbf16>
    %cst_12 = arith.constant dense<0.000000e+00> : vector<8x8xf32>
    %37 = tpu.matmul %32, %34, %cst_12 {dimension_numbers = #tpu.dot_dimension_numbers<[1], [1], [0], [0], [0, 0, 1, 0], [], []>} : vector<8x8xbf16>, vector<8x8xbf16>, vector<8x8xf32> -> vector<8x8xf32>
    %cst_13 = arith.constant dense<0xFF800000> : vector<8xf32>
    %38 = vector.multi_reduction <maximumf>, %37, %cst_13 [1] : vector<8x8xf32> to vector<8xf32>
    %39 = vector.shape_cast %38 : vector<8xf32> to vector<8x1xf32>
    %40 = vector.broadcast %39 : vector<8x1xf32> to vector<8x8xf32>
    %41 = arith.subf %37, %40 : vector<8x8xf32>
    %42 = math.exp %41 : vector<8x8xf32>
    %cst_14 = arith.constant dense<0.000000e+00> : vector<8xf32>
    %43 = vector.multi_reduction <add>, %42, %cst_14 [1] : vector<8x8xf32> to vector<8xf32>
    %44 = vector.shape_cast %43 : vector<8xf32> to vector<8x1xf32>
    %45 = tpu.reciprocal %44 {approx = true} : vector<8x1xf32> -> vector<8x1xf32>
    %46 = arith.truncf %42 : vector<8x8xf32> to vector<8x8xbf16>
    %cst_15 = arith.constant dense<0.000000e+00> : vector<8x8xf32>
    %47 = tpu.matmul %46, %36, %cst_15 {dimension_numbers = #tpu.dot_dimension_numbers<[1], [0], [0], [1], [0, 0, 1, 1], [], []>} : vector<8x8xbf16>, vector<8x8xbf16>, vector<8x8xf32> -> vector<8x8xf32>
    %48 = vector.broadcast %45 : vector<8x1xf32> to vector<8x8xf32>
    %49 = arith.mulf %47, %48 : vector<8x8xf32>
    %50 = vector.extract_strided_slice %11 {offsets = [0, 16], sizes = [8, 8], strides = [1, 1]} : vector<16x96xf32> to vector<8x8xf32>
    %51 = arith.truncf %50 : vector<8x8xf32> to vector<8x8xbf16>
    %52 = vector.extract_strided_slice %11 {offsets = [0, 48], sizes = [8, 8], strides = [1, 1]} : vector<16x96xf32> to vector<8x8xf32>
    %53 = arith.truncf %52 : vector<8x8xf32> to vector<8x8xbf16>
    %54 = vector.extract_strided_slice %11 {offsets = [0, 80], sizes = [8, 8], strides = [1, 1]} : vector<16x96xf32> to vector<8x8xf32>
    %55 = arith.truncf %54 : vector<8x8xf32> to vector<8x8xbf16>
    %cst_16 = arith.constant dense<0.000000e+00> : vector<8x8xf32>
    %56 = tpu.matmul %51, %53, %cst_16 {dimension_numbers = #tpu.dot_dimension_numbers<[1], [1], [0], [0], [0, 0, 1, 0], [], []>} : vector<8x8xbf16>, vector<8x8xbf16>, vector<8x8xf32> -> vector<8x8xf32>
    %cst_17 = arith.constant dense<0xFF800000> : vector<8xf32>
    %57 = vector.multi_reduction <maximumf>, %56, %cst_17 [1] : vector<8x8xf32> to vector<8xf32>
    %58 = vector.shape_cast %57 : vector<8xf32> to vector<8x1xf32>
    %59 = vector.broadcast %58 : vector<8x1xf32> to vector<8x8xf32>
    %60 = arith.subf %56, %59 : vector<8x8xf32>
    %61 = math.exp %60 : vector<8x8xf32>
    %cst_18 = arith.constant dense<0.000000e+00> : vector<8xf32>
    %62 = vector.multi_reduction <add>, %61, %cst_18 [1] : vector<8x8xf32> to vector<8xf32>
    %63 = vector.shape_cast %62 : vector<8xf32> to vector<8x1xf32>
    %64 = tpu.reciprocal %63 {approx = true} : vector<8x1xf32> -> vector<8x1xf32>
    %65 = arith.truncf %61 : vector<8x8xf32> to vector<8x8xbf16>
    %cst_19 = arith.constant dense<0.000000e+00> : vector<8x8xf32>
    %66 = tpu.matmul %65, %55, %cst_19 {dimension_numbers = #tpu.dot_dimension_numbers<[1], [0], [0], [1], [0, 0, 1, 1], [], []>} : vector<8x8xbf16>, vector<8x8xbf16>, vector<8x8xf32> -> vector<8x8xf32>
    %67 = vector.broadcast %64 : vector<8x1xf32> to vector<8x8xf32>
    %68 = arith.mulf %66, %67 : vector<8x8xf32>
    %69 = vector.extract_strided_slice %11 {offsets = [0, 24], sizes = [8, 8], strides = [1, 1]} : vector<16x96xf32> to vector<8x8xf32>
    %70 = arith.truncf %69 : vector<8x8xf32> to vector<8x8xbf16>
    %71 = vector.extract_strided_slice %11 {offsets = [0, 56], sizes = [8, 8], strides = [1, 1]} : vector<16x96xf32> to vector<8x8xf32>
    %72 = arith.truncf %71 : vector<8x8xf32> to vector<8x8xbf16>
    %73 = vector.extract_strided_slice %11 {offsets = [0, 88], sizes = [8, 8], strides = [1, 1]} : vector<16x96xf32> to vector<8x8xf32>
    %74 = arith.truncf %73 : vector<8x8xf32> to vector<8x8xbf16>
    %cst_20 = arith.constant dense<0.000000e+00> : vector<8x8xf32>
    %75 = tpu.matmul %70, %72, %cst_20 {dimension_numbers = #tpu.dot_dimension_numbers<[1], [1], [0], [0], [0, 0, 1, 0], [], []>} : vector<8x8xbf16>, vector<8x8xbf16>, vector<8x8xf32> -> vector<8x8xf32>
    %cst_21 = arith.constant dense<0xFF800000> : vector<8xf32>
    %76 = vector.multi_reduction <maximumf>, %75, %cst_21 [1] : vector<8x8xf32> to vector<8xf32>
    %77 = vector.shape_cast %76 : vector<8xf32> to vector<8x1xf32>
    %78 = vector.broadcast %77 : vector<8x1xf32> to vector<8x8xf32>
    %79 = arith.subf %75, %78 : vector<8x8xf32>
    %80 = math.exp %79 : vector<8x8xf32>
    %cst_22 = arith.constant dense<0.000000e+00> : vector<8xf32>
    %81 = vector.multi_reduction <add>, %80, %cst_22 [1] : vector<8x8xf32> to vector<8xf32>
    %82 = vector.shape_cast %81 : vector<8xf32> to vector<8x1xf32>
    %83 = tpu.reciprocal %82 {approx = true} : vector<8x1xf32> -> vector<8x1xf32>
    %84 = arith.truncf %80 : vector<8x8xf32> to vector<8x8xbf16>
    %cst_23 = arith.constant dense<0.000000e+00> : vector<8x8xf32>
    %85 = tpu.matmul %84, %74, %cst_23 {dimension_numbers = #tpu.dot_dimension_numbers<[1], [0], [0], [1], [0, 0, 1, 1], [], []>} : vector<8x8xbf16>, vector<8x8xbf16>, vector<8x8xf32> -> vector<8x8xf32>
    %86 = vector.broadcast %83 : vector<8x1xf32> to vector<8x8xf32>
    %87 = arith.mulf %85, %86 : vector<8x8xf32>
    %88 = tpu.concatenate %30, %49, %68, %87 in 1 : vector<8x8xf32>, vector<8x8xf32>, vector<8x8xf32>, vector<8x8xf32> -> vector<8x32xf32>
    %89 = vector.extract_strided_slice %11 {offsets = [8, 0], sizes = [8, 8], strides = [1, 1]} : vector<16x96xf32> to vector<8x8xf32>
    %90 = arith.truncf %89 : vector<8x8xf32> to vector<8x8xbf16>
    %91 = vector.extract_strided_slice %11 {offsets = [8, 32], sizes = [8, 8], strides = [1, 1]} : vector<16x96xf32> to vector<8x8xf32>
    %92 = arith.truncf %91 : vector<8x8xf32> to vector<8x8xbf16>
    %93 = vector.extract_strided_slice %11 {offsets = [8, 64], sizes = [8, 8], strides = [1, 1]} : vector<16x96xf32> to vector<8x8xf32>
    %94 = arith.truncf %93 : vector<8x8xf32> to vector<8x8xbf16>
    %cst_24 = arith.constant dense<0.000000e+00> : vector<8x8xf32>
    %95 = tpu.matmul %90, %92, %cst_24 {dimension_numbers = #tpu.dot_dimension_numbers<[1], [1], [0], [0], [0, 0, 1, 0], [], []>} : vector<8x8xbf16>, vector<8x8xbf16>, vector<8x8xf32> -> vector<8x8xf32>
    %cst_25 = arith.constant dense<0xFF800000> : vector<8xf32>
    %96 = vector.multi_reduction <maximumf>, %95, %cst_25 [1] : vector<8x8xf32> to vector<8xf32>
    %97 = vector.shape_cast %96 : vector<8xf32> to vector<8x1xf32>
    %98 = vector.broadcast %97 : vector<8x1xf32> to vector<8x8xf32>
    %99 = arith.subf %95, %98 : vector<8x8xf32>
    %100 = math.exp %99 : vector<8x8xf32>
    %cst_26 = arith.constant dense<0.000000e+00> : vector<8xf32>
    %101 = vector.multi_reduction <add>, %100, %cst_26 [1] : vector<8x8xf32> to vector<8xf32>
    %102 = vector.shape_cast %101 : vector<8xf32> to vector<8x1xf32>
    %103 = tpu.reciprocal %102 {approx = true} : vector<8x1xf32> -> vector<8x1xf32>
    %104 = arith.truncf %100 : vector<8x8xf32> to vector<8x8xbf16>
    %cst_27 = arith.constant dense<0.000000e+00> : vector<8x8xf32>
    %105 = tpu.matmul %104, %94, %cst_27 {dimension_numbers = #tpu.dot_dimension_numbers<[1], [0], [0], [1], [0, 0, 1, 1], [], []>} : vector<8x8xbf16>, vector<8x8xbf16>, vector<8x8xf32> -> vector<8x8xf32>
    %106 = vector.broadcast %103 : vector<8x1xf32> to vector<8x8xf32>
    %107 = arith.mulf %105, %106 : vector<8x8xf32>
    %108 = vector.extract_strided_slice %11 {offsets = [8, 8], sizes = [8, 8], strides = [1, 1]} : vector<16x96xf32> to vector<8x8xf32>
    %109 = arith.truncf %108 : vector<8x8xf32> to vector<8x8xbf16>
    %110 = vector.extract_strided_slice %11 {offsets = [8, 40], sizes = [8, 8], strides = [1, 1]} : vector<16x96xf32> to vector<8x8xf32>
    %111 = arith.truncf %110 : vector<8x8xf32> to vector<8x8xbf16>
    %112 = vector.extract_strided_slice %11 {offsets = [8, 72], sizes = [8, 8], strides = [1, 1]} : vector<16x96xf32> to vector<8x8xf32>
    %113 = arith.truncf %112 : vector<8x8xf32> to vector<8x8xbf16>
    %cst_28 = arith.constant dense<0.000000e+00> : vector<8x8xf32>
    %114 = tpu.matmul %109, %111, %cst_28 {dimension_numbers = #tpu.dot_dimension_numbers<[1], [1], [0], [0], [0, 0, 1, 0], [], []>} : vector<8x8xbf16>, vector<8x8xbf16>, vector<8x8xf32> -> vector<8x8xf32>
    %cst_29 = arith.constant dense<0xFF800000> : vector<8xf32>
    %115 = vector.multi_reduction <maximumf>, %114, %cst_29 [1] : vector<8x8xf32> to vector<8xf32>
    %116 = vector.shape_cast %115 : vector<8xf32> to vector<8x1xf32>
    %117 = vector.broadcast %116 : vector<8x1xf32> to vector<8x8xf32>
    %118 = arith.subf %114, %117 : vector<8x8xf32>
    %119 = math.exp %118 : vector<8x8xf32>
    %cst_30 = arith.constant dense<0.000000e+00> : vector<8xf32>
    %120 = vector.multi_reduction <add>, %119, %cst_30 [1] : vector<8x8xf32> to vector<8xf32>
    %121 = vector.shape_cast %120 : vector<8xf32> to vector<8x1xf32>
    %122 = tpu.reciprocal %121 {approx = true} : vector<8x1xf32> -> vector<8x1xf32>
    %123 = arith.truncf %119 : vector<8x8xf32> to vector<8x8xbf16>
    %cst_31 = arith.constant dense<0.000000e+00> : vector<8x8xf32>
    %124 = tpu.matmul %123, %113, %cst_31 {dimension_numbers = #tpu.dot_dimension_numbers<[1], [0], [0], [1], [0, 0, 1, 1], [], []>} : vector<8x8xbf16>, vector<8x8xbf16>, vector<8x8xf32> -> vector<8x8xf32>
    %125 = vector.broadcast %122 : vector<8x1xf32> to vector<8x8xf32>
    %126 = arith.mulf %124, %125 : vector<8x8xf32>
    %127 = vector.extract_strided_slice %11 {offsets = [8, 16], sizes = [8, 8], strides = [1, 1]} : vector<16x96xf32> to vector<8x8xf32>
    %128 = arith.truncf %127 : vector<8x8xf32> to vector<8x8xbf16>
    %129 = vector.extract_strided_slice %11 {offsets = [8, 48], sizes = [8, 8], strides = [1, 1]} : vector<16x96xf32> to vector<8x8xf32>
    %130 = arith.truncf %129 : vector<8x8xf32> to vector<8x8xbf16>
    %131 = vector.extract_strided_slice %11 {offsets = [8, 80], sizes = [8, 8], strides = [1, 1]} : vector<16x96xf32> to vector<8x8xf32>
    %132 = arith.truncf %131 : vector<8x8xf32> to vector<8x8xbf16>
    %cst_32 = arith.constant dense<0.000000e+00> : vector<8x8xf32>
    %133 = tpu.matmul %128, %130, %cst_32 {dimension_numbers = #tpu.dot_dimension_numbers<[1], [1], [0], [0], [0, 0, 1, 0], [], []>} : vector<8x8xbf16>, vector<8x8xbf16>, vector<8x8xf32> -> vector<8x8xf32>
    %cst_33 = arith.constant dense<0xFF800000> : vector<8xf32>
    %134 = vector.multi_reduction <maximumf>, %133, %cst_33 [1] : vector<8x8xf32> to vector<8xf32>
    %135 = vector.shape_cast %134 : vector<8xf32> to vector<8x1xf32>
    %136 = vector.broadcast %135 : vector<8x1xf32> to vector<8x8xf32>
    %137 = arith.subf %133, %136 : vector<8x8xf32>
    %138 = math.exp %137 : vector<8x8xf32>
    %cst_34 = arith.constant dense<0.000000e+00> : vector<8xf32>
    %139 = vector.multi_reduction <add>, %138, %cst_34 [1] : vector<8x8xf32> to vector<8xf32>
    %140 = vector.shape_cast %139 : vector<8xf32> to vector<8x1xf32>
    %141 = tpu.reciprocal %140 {approx = true} : vector<8x1xf32> -> vector<8x1xf32>
    %142 = arith.truncf %138 : vector<8x8xf32> to vector<8x8xbf16>
    %cst_35 = arith.constant dense<0.000000e+00> : vector<8x8xf32>
    %143 = tpu.matmul %142, %132, %cst_35 {dimension_numbers = #tpu.dot_dimension_numbers<[1], [0], [0], [1], [0, 0, 1, 1], [], []>} : vector<8x8xbf16>, vector<8x8xbf16>, vector<8x8xf32> -> vector<8x8xf32>
    %144 = vector.broadcast %141 : vector<8x1xf32> to vector<8x8xf32>
    %145 = arith.mulf %143, %144 : vector<8x8xf32>
    %146 = vector.extract_strided_slice %11 {offsets = [8, 24], sizes = [8, 8], strides = [1, 1]} : vector<16x96xf32> to vector<8x8xf32>
    %147 = arith.truncf %146 : vector<8x8xf32> to vector<8x8xbf16>
    %148 = vector.extract_strided_slice %11 {offsets = [8, 56], sizes = [8, 8], strides = [1, 1]} : vector<16x96xf32> to vector<8x8xf32>
    %149 = arith.truncf %148 : vector<8x8xf32> to vector<8x8xbf16>
    %150 = vector.extract_strided_slice %11 {offsets = [8, 88], sizes = [8, 8], strides = [1, 1]} : vector<16x96xf32> to vector<8x8xf32>
    %151 = arith.truncf %150 : vector<8x8xf32> to vector<8x8xbf16>
    %cst_36 = arith.constant dense<0.000000e+00> : vector<8x8xf32>
    %152 = tpu.matmul %147, %149, %cst_36 {dimension_numbers = #tpu.dot_dimension_numbers<[1], [1], [0], [0], [0, 0, 1, 0], [], []>} : vector<8x8xbf16>, vector<8x8xbf16>, vector<8x8xf32> -> vector<8x8xf32>
    %cst_37 = arith.constant dense<0xFF800000> : vector<8xf32>
    %153 = vector.multi_reduction <maximumf>, %152, %cst_37 [1] : vector<8x8xf32> to vector<8xf32>
    %154 = vector.shape_cast %153 : vector<8xf32> to vector<8x1xf32>
    %155 = vector.broadcast %154 : vector<8x1xf32> to vector<8x8xf32>
    %156 = arith.subf %152, %155 : vector<8x8xf32>
    %157 = math.exp %156 : vector<8x8xf32>
    %cst_38 = arith.constant dense<0.000000e+00> : vector<8xf32>
    %158 = vector.multi_reduction <add>, %157, %cst_38 [1] : vector<8x8xf32> to vector<8xf32>
    %159 = vector.shape_cast %158 : vector<8xf32> to vector<8x1xf32>
    %160 = tpu.reciprocal %159 {approx = true} : vector<8x1xf32> -> vector<8x1xf32>
    %161 = arith.truncf %157 : vector<8x8xf32> to vector<8x8xbf16>
    %cst_39 = arith.constant dense<0.000000e+00> : vector<8x8xf32>
    %162 = tpu.matmul %161, %151, %cst_39 {dimension_numbers = #tpu.dot_dimension_numbers<[1], [0], [0], [1], [0, 0, 1, 1], [], []>} : vector<8x8xbf16>, vector<8x8xbf16>, vector<8x8xf32> -> vector<8x8xf32>
    %163 = vector.broadcast %160 : vector<8x1xf32> to vector<8x8xf32>
    %164 = arith.mulf %162, %163 : vector<8x8xf32>
    %165 = tpu.concatenate %107, %126, %145, %164 in 1 : vector<8x8xf32>, vector<8x8xf32>, vector<8x8xf32>, vector<8x8xf32> -> vector<8x32xf32>
    %166 = tpu.concatenate %88, %165 in 0 : vector<8x32xf32>, vector<8x32xf32> -> vector<16x32xf32>
    %c0_40 = arith.constant 0 : index
    %c0_41 = arith.constant 0 : index
    %c0_42 = arith.constant 0 : index
    %167 = vector.load %arg7[%c0_40, %c0_41, %c0_42] : memref<1x8x32xf32, #tpu.memory_space<vmem>>, vector<1x8x32xf32>
    %168 = vector.shape_cast %167 : vector<1x8x32xf32> to vector<8x32xf32>
    %169 = vector.extract_strided_slice %168 {offsets = [0, 0], sizes = [1, 32], strides = [1, 1]} : vector<8x32xf32> to vector<1x32xf32>
    %170 = vector.extract_strided_slice %168 {offsets = [1, 0], sizes = [1, 32], strides = [1, 1]} : vector<8x32xf32> to vector<1x32xf32>
    %171 = vector.extract_strided_slice %168 {offsets = [2, 0], sizes = [1, 32], strides = [1, 1]} : vector<8x32xf32> to vector<1x32xf32>
    %172 = vector.extract_strided_slice %168 {offsets = [3, 0], sizes = [1, 32], strides = [1, 1]} : vector<8x32xf32> to vector<1x32xf32>
    %173 = vector.extract_strided_slice %168 {offsets = [4, 0], sizes = [1, 32], strides = [1, 1]} : vector<8x32xf32> to vector<1x32xf32>
    %174 = vector.extract_strided_slice %168 {offsets = [5, 0], sizes = [1, 32], strides = [1, 1]} : vector<8x32xf32> to vector<1x32xf32>
    %175 = arith.truncf %166 : vector<16x32xf32> to vector<16x32xbf16>
    %c0_43 = arith.constant 0 : index
    %c0_44 = arith.constant 0 : index
    %c0_45 = arith.constant 0 : index
    %176 = vector.load %arg6[%c0_43, %c0_44, %c0_45] : memref<1x32x32xbf16, #tpu.memory_space<vmem>>, vector<1x32x32xbf16>
    %177 = vector.shape_cast %176 : vector<1x32x32xbf16> to vector<32x32xbf16>
    %cst_46 = arith.constant dense<0.000000e+00> : vector<16x32xf32>
    %178 = tpu.matmul %175, %177, %cst_46 {dimension_numbers = #tpu.dot_dimension_numbers<[1], [0], [0], [1], [0, 0, 1, 1], [], []>} : vector<16x32xbf16>, vector<32x32xbf16>, vector<16x32xf32> -> vector<16x32xf32>
    %179 = vector.broadcast %169 : vector<1x32xf32> to vector<16x32xf32>
    %180 = arith.addf %178, %179 : vector<16x32xf32>
    %181 = arith.addf %3, %180 : vector<16x32xf32>
    %cst_47 = arith.constant dense<0.000000e+00> : vector<16xf32>
    %182 = vector.multi_reduction <add>, %181, %cst_47 [1] : vector<16x32xf32> to vector<16xf32>
    %183 = vector.shape_cast %182 : vector<16xf32> to vector<16x1xf32>
    %cst_48 = arith.constant 3.200000e+01 : f32
    %184 = vector.broadcast %cst_48 : f32 to vector<16x1xf32>
    %185 = arith.divf %183, %184 : vector<16x1xf32>
    %186 = vector.broadcast %185 : vector<16x1xf32> to vector<16x32xf32>
    %187 = arith.subf %181, %186 : vector<16x32xf32>
    %188 = arith.mulf %187, %187 : vector<16x32xf32>
    %cst_49 = arith.constant dense<0.000000e+00> : vector<16xf32>
    %189 = vector.multi_reduction <add>, %188, %cst_49 [1] : vector<16x32xf32> to vector<16xf32>
    %190 = vector.shape_cast %189 : vector<16xf32> to vector<16x1xf32>
    %cst_50 = arith.constant 3.200000e+01 : f32
    %191 = vector.broadcast %cst_50 : f32 to vector<16x1xf32>
    %192 = arith.divf %190, %191 : vector<16x1xf32>
    %193 = vector.broadcast %185 : vector<16x1xf32> to vector<16x32xf32>
    %194 = arith.subf %181, %193 : vector<16x32xf32>
    %cst_51 = arith.constant 9.99999974E-6 : f32
    %195 = vector.broadcast %cst_51 : f32 to vector<16x1xf32>
    %196 = arith.addf %192, %195 : vector<16x1xf32>
    %197 = math.rsqrt %196 : vector<16x1xf32>
    %198 = vector.broadcast %197 : vector<16x1xf32> to vector<16x32xf32>
    %199 = arith.mulf %194, %198 : vector<16x32xf32>
    %200 = vector.broadcast %170 : vector<1x32xf32> to vector<16x32xf32>
    %201 = arith.mulf %199, %200 : vector<16x32xf32>
    %202 = vector.broadcast %171 : vector<1x32xf32> to vector<16x32xf32>
    %203 = arith.addf %201, %202 : vector<16x32xf32>
    %204 = arith.truncf %203 : vector<16x32xf32> to vector<16x32xbf16>
    %c0_52 = arith.constant 0 : index
    %c0_53 = arith.constant 0 : index
    %c0_54 = arith.constant 0 : index
    %205 = vector.load %arg8[%c0_52, %c0_53, %c0_54] : memref<1x32x64xbf16, #tpu.memory_space<vmem>>, vector<1x32x64xbf16>
    %206 = vector.shape_cast %205 : vector<1x32x64xbf16> to vector<32x64xbf16>
    %cst_55 = arith.constant dense<0.000000e+00> : vector<16x64xf32>
    %207 = tpu.matmul %204, %206, %cst_55 {dimension_numbers = #tpu.dot_dimension_numbers<[1], [0], [0], [1], [0, 0, 1, 1], [], []>} : vector<16x32xbf16>, vector<32x64xbf16>, vector<16x64xf32> -> vector<16x64xf32>
    %c0_56 = arith.constant 0 : index
    %c0_57 = arith.constant 0 : index
    %c0_58 = arith.constant 0 : index
    %208 = vector.load %arg9[%c0_56, %c0_57, %c0_58] : memref<1x1x64xf32, #tpu.memory_space<vmem>>, vector<1x1x64xf32>
    %209 = vector.shape_cast %208 : vector<1x1x64xf32> to vector<1x64xf32>
    %210 = vector.broadcast %209 : vector<1x64xf32> to vector<16x64xf32>
    %211 = arith.addf %207, %210 : vector<16x64xf32>
    %cst_59 = arith.constant 0.000000e+00 : f32
    %212 = vector.broadcast %cst_59 : f32 to vector<16x64xf32>
    %213 = arith.maximumf %211, %212 : vector<16x64xf32>
    %214 = arith.truncf %213 : vector<16x64xf32> to vector<16x64xbf16>
    %c0_60 = arith.constant 0 : index
    %c0_61 = arith.constant 0 : index
    %c0_62 = arith.constant 0 : index
    %215 = vector.load %arg10[%c0_60, %c0_61, %c0_62] : memref<1x64x32xbf16, #tpu.memory_space<vmem>>, vector<1x64x32xbf16>
    %216 = vector.shape_cast %215 : vector<1x64x32xbf16> to vector<64x32xbf16>
    %cst_63 = arith.constant dense<0.000000e+00> : vector<16x32xf32>
    %217 = tpu.matmul %214, %216, %cst_63 {dimension_numbers = #tpu.dot_dimension_numbers<[1], [0], [0], [1], [0, 0, 1, 1], [], []>} : vector<16x64xbf16>, vector<64x32xbf16>, vector<16x32xf32> -> vector<16x32xf32>
    %218 = vector.broadcast %172 : vector<1x32xf32> to vector<16x32xf32>
    %219 = arith.addf %217, %218 : vector<16x32xf32>
    %220 = arith.addf %203, %219 : vector<16x32xf32>
    %cst_64 = arith.constant dense<0.000000e+00> : vector<16xf32>
    %221 = vector.multi_reduction <add>, %220, %cst_64 [1] : vector<16x32xf32> to vector<16xf32>
    %222 = vector.shape_cast %221 : vector<16xf32> to vector<16x1xf32>
    %cst_65 = arith.constant 3.200000e+01 : f32
    %223 = vector.broadcast %cst_65 : f32 to vector<16x1xf32>
    %224 = arith.divf %222, %223 : vector<16x1xf32>
    %225 = vector.broadcast %224 : vector<16x1xf32> to vector<16x32xf32>
    %226 = arith.subf %220, %225 : vector<16x32xf32>
    %227 = arith.mulf %226, %226 : vector<16x32xf32>
    %cst_66 = arith.constant dense<0.000000e+00> : vector<16xf32>
    %228 = vector.multi_reduction <add>, %227, %cst_66 [1] : vector<16x32xf32> to vector<16xf32>
    %229 = vector.shape_cast %228 : vector<16xf32> to vector<16x1xf32>
    %cst_67 = arith.constant 3.200000e+01 : f32
    %230 = vector.broadcast %cst_67 : f32 to vector<16x1xf32>
    %231 = arith.divf %229, %230 : vector<16x1xf32>
    %232 = vector.broadcast %224 : vector<16x1xf32> to vector<16x32xf32>
    %233 = arith.subf %220, %232 : vector<16x32xf32>
    %cst_68 = arith.constant 9.99999974E-6 : f32
    %234 = vector.broadcast %cst_68 : f32 to vector<16x1xf32>
    %235 = arith.addf %231, %234 : vector<16x1xf32>
    %236 = math.rsqrt %235 : vector<16x1xf32>
    %237 = vector.broadcast %236 : vector<16x1xf32> to vector<16x32xf32>
    %238 = arith.mulf %233, %237 : vector<16x32xf32>
    %239 = vector.broadcast %173 : vector<1x32xf32> to vector<16x32xf32>
    %240 = arith.mulf %238, %239 : vector<16x32xf32>
    %241 = vector.broadcast %174 : vector<1x32xf32> to vector<16x32xf32>
    %242 = arith.addf %240, %241 : vector<16x32xf32>
    %c0_69 = arith.constant 0 : index
    %c0_70 = arith.constant 0 : index
    %243 = vector.load %arg12[%c0_69, %c0_70] : memref<16x32xf32, #tpu.memory_space<vmem>>, vector<16x32xf32>
    tpu.vector_store %arg12[%c0_69, %c0_70], %242 {strides = array<i32>} : memref<16x32xf32, #tpu.memory_space<vmem>>, vector<16x32xf32>,
    %c1_i32 = arith.constant 1 : i32
    %244 = arith.cmpi eq, %arg1, %c1_i32 : i32
    %245 = arith.extui %244 : i1 to i32
    %c0_i32_71 = arith.constant 0 : i32
    %246 = arith.cmpi ne, %245, %c0_i32_71 : i32
    scf.if %246 {
      %c0_72 = arith.constant 0 : index
      %c0_73 = arith.constant 0 : index
      %247 = vector.load %arg11[%c0_72, %c0_73] : memref<16x32xf32, #tpu.memory_space<vmem>>, vector<16x32xf32>
      tpu.vector_store %arg11[%c0_72, %c0_73], %242 {strides = array<i32>} : memref<16x32xf32, #tpu.memory_space<vmem>>, vector<16x32xf32>,
    } else {
    }
    return
  }
  func.func @transform_0(%arg0: i32, %arg1: i32) -> (i32, i32) {
    %c0_i32 = arith.constant 0 : i32
    %c0_i32_0 = arith.constant 0 : i32
    return %arg0, %c0_i32 : i32, i32
  }
  func.func @transform_1(%arg0: i32, %arg1: i32) -> (i32, i32) {
    %c0_i32 = arith.constant 0 : i32
    %c0_i32_0 = arith.constant 0 : i32
    %c0_i32_1 = arith.constant 0 : i32
    return %c0_i32, %c0_i32_0 : i32, i32
  }
  func.func @transform_2(%arg0: i32, %arg1: i32) -> (i32, i32, i32) {
    %c0_i32 = arith.constant 0 : i32
    %c0_i32_0 = arith.constant 0 : i32
    %c0_i32_1 = arith.constant 0 : i32
    return %arg1, %c0_i32, %c0_i32_0 : i32, i32, i32
  }
  func.func @transform_3(%arg0: i32, %arg1: i32) -> (i32, i32, i32) {
    %c0_i32 = arith.constant 0 : i32
    %c0_i32_0 = arith.constant 0 : i32
    %c0_i32_1 = arith.constant 0 : i32
    return %arg1, %c0_i32, %c0_i32_0 : i32, i32, i32
  }
  func.func @transform_4(%arg0: i32, %arg1: i32) -> (i32, i32, i32) {
    %c0_i32 = arith.constant 0 : i32
    %c0_i32_0 = arith.constant 0 : i32
    %c0_i32_1 = arith.constant 0 : i32
    return %arg1, %c0_i32, %c0_i32_0 : i32, i32, i32
  }
  func.func @transform_5(%arg0: i32, %arg1: i32) -> (i32, i32, i32) {
    %c0_i32 = arith.constant 0 : i32
    %c0_i32_0 = arith.constant 0 : i32
    %c0_i32_1 = arith.constant 0 : i32
    return %arg1, %c0_i32, %c0_i32_0 : i32, i32, i32
  }
  func.func @transform_6(%arg0: i32, %arg1: i32) -> (i32, i32, i32) {
    %c0_i32 = arith.constant 0 : i32
    %c0_i32_0 = arith.constant 0 : i32
    %c0_i32_1 = arith.constant 0 : i32
    return %arg1, %c0_i32, %c0_i32_0 : i32, i32, i32
  }
  func.func @transform_7(%arg0: i32, %arg1: i32) -> (i32, i32, i32) {
    %c0_i32 = arith.constant 0 : i32
    %c0_i32_0 = arith.constant 0 : i32
    %c0_i32_1 = arith.constant 0 : i32
    return %arg1, %c0_i32, %c0_i32_0 : i32, i32, i32
  }
  func.func @transform_8(%arg0: i32, %arg1: i32) -> (i32, i32, i32) {
    %c0_i32 = arith.constant 0 : i32
    %c0_i32_0 = arith.constant 0 : i32
    %c0_i32_1 = arith.constant 0 : i32
    return %arg1, %c0_i32, %c0_i32_0 : i32, i32, i32
  }
  func.func @transform_9(%arg0: i32, %arg1: i32) -> (i32, i32) {
    %c0_i32 = arith.constant 0 : i32
    %c0_i32_0 = arith.constant 0 : i32
    return %arg0, %c0_i32 : i32, i32
  }
}

</mosaic_0001>

<bundles_post_ra>
// kernel: tpu_custom_call.1
= control target key start
LH: loop header
LB: loop body
LE: loop exit
PB: predicated region body
PF: predicated region fallthrough
CT: control target
= control target key end

     0   :  { %s2618_s0 = inlined_call_operand.vmem [shape: f32[32,32], index: 0, kind: input, shape index: {}]   ;;  %s2619_s1 = inlined_call_operand.hbm [shape: f32[16,32], index: 1, kind: input, shape index: {}]   ;;  %s2620_s2 = inlined_call_operand.vmem [shape: bf16[2,32,96], index: 2, kind: input, shape index: {}]   ;;  %s2621_s3 = inlined_call_operand.hbm [shape: f32[2,1,96], index: 3, kind: input, shape index: {}]   ;;  %s2622_s4 = inlined_call_operand.vmem [shape: bf16[2,32,32], index: 4, kind: input, shape index: {}]   ;;  %s2623_s5 = inlined_call_operand.hbm [shape: f32[2,8,32], index: 5, kind: input, shape index: {}]   ;;  %s2624_s6 = inlined_call_operand.hbm [shape: bf16[2,32,64], index: 6, kind: input, shape index: {}]   ;;  %s2625_s7 = inlined_call_operand.vmem [shape: f32[2,1,64], index: 7, kind: input, shape index: {}]   ;;  %s2626_s8 = inlined_call_operand.vmem [shape: bf16[2,64,32], index: 8, kind: input, shape index: {}]   ;;  %s2627_s9 = inlined_call_operand.hbm [shape: f32[32,32], index: 9, kind: output, shape index: {}]  }
   0x1   :  { %2642 = sst [smem:[#allocation28_spill]] %s2619_s1 }
   0x2   :  { %2643 = sst [smem:[#allocation29_spill]] %s2620_s2 }
   0x3   :  { %2644 = sst [smem:[#allocation30_spill]] %s2621_s3 }
   0x4   :  { %2645 = sst [smem:[#allocation31_spill]] %s2622_s4 }
   0x5   :  { %2646 = sst [smem:[#allocation32_spill]] %s2623_s5 }
   0x6   :  { %2647 = sst [smem:[#allocation33_spill]] %s2624_s6 }
   0x7   :  { %2648 = sst [smem:[#allocation34_spill]] %s2625_s7 }
   0x8   :  { %2649 = sst [smem:[#allocation35_spill]] %s2626_s8 }
   0x9   :  { %2650 = sst [smem:[#allocation36_spill]] %s2627_s9 }
   0xa   :  { %14 = vsyncpa [#allocation4], 0 }
   0xb   :  { %15 = vsyncpa [#allocation7], 0 }
   0xc   :  { %17 = vsyncpa [#allocation7 + $0x1], 0 }
   0xd   :  { %18 = vsyncpa [#allocation10], 0 }
   0xe   :  { %20 = vsyncpa [#allocation10 + $0x1], 0 }
   0xf   :  { %21 = vsyncpa [#allocation5], 0 }
  0x10   :  { %23 = vsyncpa [#allocation5 + $0x1], 0  ;;  %s2172_s30 = smov 0   ;;  %s2174_s10 = smov 0  }
  0x11   :  { %s2176_s11 = smov 0   ;;  %s2178_s12 = smov 0  }
  0x12   :  { %s2180_s13 = smov 0   ;;  %s2182_s14 = smov 0  }
  0x13   :  { %s2184_s15 = smov 0   ;;  %s2186_s16 = smov 0  }
  0x14   :  { %s2188_s17 = smov 0   ;;  %s2190_s18 = smov 0  }
  0x15   :  { %s2192_s19 = smov 0  }
  0x16 LB: > { %2651 = sst [smem:[#allocation16_spill]] %s2059_s30  ;;  %s38_s20 = sadd.s32 1, %s2091_s17  ;;  %s2099_s19 = sphi %s2192_s19, %s29_s19   ;;  %s2095_s18 = sphi %s2190_s18, %s2693_s18   ;;  %s2091_s17 = sphi %s2188_s17, %s2692_s17   ;;  %s2087_s16 = sphi %s2186_s16, %s2691_s16   ;;  %s2083_s15 = sphi %s2184_s15, %s2690_s15   ;;  %s2079_s14 = sphi %s2182_s14, %s2689_s14   ;;  %s2075_s13 = sphi %s2180_s13, %s2697_s13   ;;  %s2071_s12 = sphi %s2178_s12, %s2696_s12   ;;  %s2067_s11 = sphi %s2176_s11, %s2687_s11   ;;  %s2063_s10 = sphi %s2174_s10, %s2695_s10   ;;  %s2059_s30 = sphi %s2172_s30, %s2694_s30  }
  0x17   : > { %2652 = sst [smem:[#allocation17_spill]] %s2067_s11  ;;  %s41_s21 = sadd.s32 1, %s2095_s18 }
  0x18   : > { %2653 = sst [smem:[#allocation18_spill]] %s2079_s14  ;;  %p39_p0 = scmp.ge.s32.totalorder %s38_s20, 2 }
  0x19   : > { %2654 = sst [smem:[#allocation19_spill]] %s2091_s17  ;;  %s121_s22 = sadd.s32 1, %s2079_s14 }
  0x1a   : > { %2655 = sst [smem:[#allocation20_spill]] %s2095_s18  ;;  %p128_p1 = scmp.ne.s32.totalorder %s2079_s14, %s2075_s13 }
  0x1b   : > { %2656 = sst [smem:[#allocation21_spill]] %s2099_s19  ;;  %p129_p2 = scmp.eq.s32.totalorder %s2099_s19, 0 }
  0x1c   : > { %s2699_s20 = smov (%p39_p0, %s38_s20), 0  ;;  %s2701_s21 = smov (!%p39_p0, %s41_s21), %s2095_s18 }
  0x1d   : > { %2657 = sst [smem:[#allocation22_spill]] %s2699_s20  ;;  %s118_s23 = ssub.s32 %s2091_s17, %s2699_s20 }
  0x1e   : > { %p2238_p3 = por %p129_p2, %p128_p1  ;;  %p43_p4 = scmp.ge.s32.totalorder %s2701_s21, 2 }
  0x1f   : > { %p119_p5 = scmp.eq.s32.totalorder %s118_s23, 0  ;;  %p134_p6 = scmp.ne.s32.totalorder %s2075_s13, %s2071_s12 }
  0x20   : > { %s2703_s21 = smov (%p43_p4, %s2701_s21), 0  ;;  %p1678_p7 = scmp.lt.s32.totalorder %s2099_s19, 4 }
  0x21   : > { %2659 = sst [smem:[#allocation23_spill]] %s2703_s21  ;;  %s274_s26 = ssub.s32 %s2095_s18, %s2703_s21 }
  0x22   : > { %s2247_s25 = scalar_select %p119_p5, %s2079_s14, %s121_s22  }
  0x23   : > { %p2252_p8 = scmp.eq.s32.totalorder %s274_s26, 0  ;;  %s345_s28 = sand.u32 1, %s2099_s19  }
  0x24   : > { %2660 = sst [smem:[#allocation24_spill]] %s2247_s25  ;;  %s2258_s29 = sand.u32 1, %s2079_s14  }
  0x25   : > { %s2662_s3 = sld [smem:[#allocation30_spill]]  ;;  %s348_s26 = scalar_lea.vmem [#allocation6], %s2258_s29 }
  0x26   : > { %s355_s18 = sshll.u32 %s348_s26, 4  ;;  %p2267_p9 = pnand %p1678_p7, %p2238_p3  ;;  %s356_s18 = int_to_ptr.vmem [resolvable:$true] %s355_s18 }
  0x27   : > { %s2271_s20 = scalar_lea.sflag [#allocation7], %s345_s28  ;;  %s2277_s23 = sadd.s32 4294967295, %s2099_s19  }
  0x28   : > { %p135_p10 = scmp.eq.s32.totalorder %s2277_s23, 0  ;;  %s277_s26 = sadd.s32 1, %s2067_s11 }
  0x29   : > { %s2285_s24 = scalar_select %p2252_p8, %s2067_s11, %s277_s26  }
  0x2a   : > { %p2292_p11 = por %p135_p10, %p134_p6  ;;  %p287_p12 = scmp.ne.s32.totalorder %s2067_s11, %s2063_s10 }
  0x2b   : > { %s351_s22 = scalar_lea.hbm %s2662_s3, %s2091_s17  ;;  %2664 = sst [smem:[#allocation25_spill]] %s2285_s24 }
  0x2c   : > { %s353_s21 = sshll.u32 %s351_s22, 4  ;;  %s1543_s22 = sadd.s32 4294967294, %s2099_s19   ;;  %s354_s21 = int_to_ptr.hbm [resolvable:$true] %s353_s21 }
  0x2d   : > { %1666 = dma.hbm_to_vmem [thread:$0]  (!%p2267_p9), %s354_s21, 16, %s356_s18, %s2271_s20  }
  0x2e   : > { %p288_p13 = scmp.eq.s32.totalorder %s2277_s23, 3  ;;  %p293_p0 = scmp.ne.s32.totalorder %s2063_s10, %s2059_s30 }
  0x2f   : > { %p294_p1 = scmp.eq.s32.totalorder %s1543_s22, 3  ;;  %p1544_p2 = scmp.ge.s32.totalorder %s2099_s19, 1 }
  0x30   : > { %p2302_p3 = por %p288_p13, %p287_p12  ;;  %p301_p4 = scmp.lt.s32.totalorder %s2099_s19, 5 }
  0x31   : > { %p2307_p5 = por %p294_p1, %p293_p0  ;;  %s2671_s1 = sld [smem:[#allocation28_spill]] }
  0x32   : > { %s2666_s18 = scalar_select %p2302_p3, 1, 0 }
  0x33   : > { %s2668_s12 = scalar_select %p2307_p5, 1, 0 }
  0x34   : > { %2667 = sst [smem:[#allocation26_spill]] %s2666_s18  ;;  %p2311_p6 = pnand %p1544_p2, %p301_p4 }
  0x35   : > { %2669 = sst [smem:[#allocation27_spill]] %s2668_s12  ;;  %s2101_s22 = smov [#allocation3]  }
  0x36   : > { %p1659_p7 = pneg %p2311_p6  ;;  %s314_s14 = sshll.u32 %s2101_s22, 4  ;;  %s315_s14 = int_to_ptr.vmem [resolvable:$true] %s314_s14 }
  0x37   : > { %s312_s26 = sshll.u32 %s2671_s1, 4  ;;  %s1547_s24 = sshll.u32 %s2258_s29, 3  ;;  %s313_s26 = int_to_ptr.hbm [resolvable:$true] %s312_s26 }
  0x38   : > { %p1660_p8 = pnand %p1659_p7, %p135_p10  ;;  %s1548_s11 = sshll.u32 %s2091_s17, 3 }
  0x39   : > { %s2102_s12 = smov 128   ;;  %s2103_s30 = smov 8  }
  0x3a   : > { %1662 = dma.hbm_to_vmem [thread:$0]  (!%p1660_p8), %s313_s26, 256, %s315_s14, [#allocation4], %s2102_s12, %s2102_s12, %s2103_s30  }
  0x3b   : > { %s2672_s5 = sld [smem:[#allocation32_spill]]  ;;  %s374_s19 = scalar_lea.vmem [#allocation8], %s1547_s24 }
  0x3c   : > { %s382_s9 = sshll.u32 %s374_s19, 4  ;;  %s1549_s22 = sshll.u32 %s2258_s29, 4  ;;  %s383_s9 = int_to_ptr.vmem [resolvable:$true] %s382_s9 }
  0x3d   : > { %s1632_s8 = sshll.u32 %s2091_s17, 4  ;;  %s2673_s6 = sld [smem:[#allocation33_spill]] }
  0x3e   : > { %s393_s14 = scalar_lea.vmem [#allocation9], %s1549_s22  ;;  %s2104_s24 = smov 64  }
  0x3f   : > { %s401_s12 = sshll.u32 %s393_s14, 4  ;;  %s2105_s19 = smov 4   ;;  %s402_s12 = int_to_ptr.vmem [resolvable:$true] %s401_s12 }
  0x41   : > { %s378_s1 = scalar_lea.hbm %s2672_s5, %s1548_s11  ;;  %s390_s11 = scalar_lea.sflag [#allocation10], %s2258_s29 }
  0x42   : > { %s380_s18 = sshll.u32 %s378_s1, 4  ;;  %427 = sbr.rel (%p2311_p6) target bundleno = 1962 (0x7aa), region = 56  ;;  %s381_s18 = int_to_ptr.hbm [resolvable:$true] %s380_s18 }
  0x43   : > { %1669 = dma.hbm_to_vmem [thread:$0]  (!%p2267_p9), %s381_s18, 128, %s383_s9, %s2271_s20  }
  0x44   : > { %s398_s2 = scalar_lea.hbm %s2673_s6, %s1632_s8 }
  0x45   : > { %s399_s30 = sshll.u32 %s398_s2, 4  ;;  %s400_s30 = int_to_ptr.hbm [resolvable:$true] %s399_s30 }
  0x46   : > { %1672 = dma.hbm_to_vmem [thread:$0]  (!%p2267_p9), %s400_s30, 256, %s402_s12, %s390_s11, %s2104_s24, %s2104_s24, %s2105_s19  }
  0x47   : > { %2042 = dma.done.wait (%p135_p10), [#allocation4], 256  }
  0x48   : > { %2044 = vsyncadd (%p135_p10), [#allocation4], 4294967040  ;;  %s434_s1 = sand.u32 1, %s2277_s23   ;;  %s2346_s2 = sand.u32 1, %s2075_s13  }
  0x49   : > { %s435_s4 = scalar_lea.sflag [#allocation7], %s434_s1 }
  0x4a   : > { %2046 = dma.done.wait (%p2292_p11), %s435_s4, 144  }
  0x4b   : > { %2048 = vsyncadd (%p2292_p11), %s435_s4, 4294967152  ;;  %s1554_s8 = sshll.u32 %s2346_s2, 3  ;;  %s1555_s9 = sshll.u32 %s2346_s2, 4 }
  0x4c   : > { %s2355_s25 = scalar_lea.vmem [#allocation8], %s1554_s8  ;;  %s454_s29 = scalar_lea.sflag [#allocation10], %s2346_s2 }
  0x4d   : > { %s2358_s20 = scalar_lea.vmem [#allocation9], %s1555_s9 }
  0x4e   : > { %2050 = dma.done.wait (%p2292_p11), %s454_s29, 256  }
  0x4f   : > { %2052 = vsyncadd (%p2292_p11), %s454_s29, 4294967040  ;;  %s2640_s23 = sand.u32 1, %s2063_s10   ;;  %s1557_s18 = sshll.u32 %s2087_s16, 1 }
  0x50   : > { %s1556_s21 = sshll.u32 %s2640_s23, 4  ;;  %p526_p9 = scmp.lt.s32.totalorder %s1557_s18, 3 }
  0x51   : > { %p531_p10 = scmp.lt.s32.totalorder %s2083_s15, 1  ;;  %s2674_s11 = sld [smem:[#allocation29_spill]] }
  0x52   : > { %s2705_s18 = smov (!%p526_p9, %s1557_s18), 3  ;;  %s2675_s4 = sld [smem:[#allocation31_spill]] }
  0x53   : > { %s2370_s26 = scalar_select %p531_p10, %s2083_s15, 1 }
  0x54   : > { %s1558_s27 = sshll.u32 %s2705_s18, 3  ;;  %s2676_s23 = sld [smem:[#allocation34_spill]] }
  0x55   : > { %s529_s22 = scalar_lea.vmem %s2618_s0, %s1558_s27  ;;  %s1633_s30 = sshll.u32 %s2370_s26, 4 }
  0x56   : > { %s1635_s5 = sshll.u32 %s2370_s26, 5  ;;  %s2677_s17 = sld [smem:[#allocation35_spill]] }
  0x57   : > { %s535_s24 = scalar_lea.vmem %s2674_s11, %s1633_s30  ;;  %s2394_s27 = scalar_lea.vmem [#allocation11], %s1556_s21 }
  0x58   : > { %s2382_s8 = scalar_lea.vmem %s2675_s4, %s1633_s30  ;;  %p1565_p11 = scmp.ne.s32.totalorder %s2083_s15, 0 }
  0x5a   : > { %s543_s7 = scalar_lea.vmem %s2676_s23, %s2370_s26  ;;  %554 = sbr.rel (%p1565_p11) target bundleno = 100 (0x64), region = 76 }
  0x5c   : > { %s2392_s3 = scalar_lea.vmem %s2677_s17, %s1635_s5 }
  0x5f   : > { %v555_v0 = vld [vmem:[%s529_s22] sm:$0xff]  ;;  %v557_v1 = vld [vmem:[#allocation3] sm:$0xff]  ;;  %vm561_vm0 = vcmask 261120   ;;  %v556_v2 = vld [vmem:[%s529_s22 + $0x8] sm:$0xff] }
  0x60   : > { %v559_v3 = vadd.f32 %v557_v1, %v555_v0  ;;  %v558_v4 = vld [vmem:[#allocation3 + $0x8] sm:$0xff] }
  0x61   : > { %v560_v5 = vadd.f32 %v558_v4, %v556_v2 }
  0x62   : > { %562 = vst.msk [vmem:[#allocation2] sm:$0xff] %vm561_vm0, %v559_v3 }
  0x63   : > { %563 = vst.msk [vmem:[#allocation2 + $0x8] sm:$0xff] %vm561_vm0, %v560_v5 }
  0x64 PF: > { %v1637_v6 = vld [vmem:[%s535_s24 + $0x8] sm:$0xff]  ;;  %v1636_v7 = vld [vmem:[%s535_s24] sm:$0xff]  ;;  %vm587_vm1 = vcmask 261120   ;;  %s2678_s5 = scalar_lea.vmem [#allocation6], %s2346_s2  ;;  %s2106_s6 = smov 104   ;;  %vm609_vm2 = vcmask 64512  }
  0x65   : > { %597 = vmatpush.bf16.msra.mxu0 %v1637_v6  ;;  %v1805_v11 = vld [vmem:[%s2678_s5] ss:$0 sm:$0xff]  ;;  %s2107_s17 = smov 120   ;;  %s2108_s23 = smov 96   ;;  %vm645_vm3 = vcmask 1043456   ;;  %vm844_vm4 = vcmask 130048  }
  0x66   : > { %s2109_s21 = smov 80   ;;  %s2110_s28 = smov 72   ;;  %vm846_vm5 = vcmask 195584   ;;  %vm1256_vm13 = vcmask 523264  }
  0x67   : > { %s2111_s2 = smov 88   ;;  %s2112_s22 = smov 112  }
  0x68   : > { %s2113_s30 = smov 48   ;;  %s2114_s14 = smov 64  }
  0x69   : > { %v2397_v8 = vld [vmem:[#allocation2] sm:$0xff]  ;;  %598 = vmatpush.bf16.msra.mxu0 %v1636_v7  ;;  %s2115_s12 = smov 56   ;;  %s2116_s11 = smov 40  }
  0x6a   : > { %v2399_v9 = vld [vmem:[#allocation2 + $0x8] sm:$0xff]  ;;  %s2117_s24 = smov 8   ;;  %s2118_s19 = smov 24  }
  0x6b   : > { %v566_v10 = vpack.c.bf16 %v2399_v9, %v2397_v8  ;;  %s2119_s1 = smov 16   ;;  %p1626_p12 = scmp.ne.s32.totalorder %s2083_s15, 1 }
  0x6d   : > { %1574 = vmatmul.msk.bf16.vlgmr.msra.gmra.mxu0 %vm587_vm1, %v566_v10 }
  0xea   : > { %v600_v12 = vpop.f32.mrf.mxu0 }
  0xeb   : > { %v601_v13 = vadd.f32 %v1805_v11, %v600_v12 }
  0xed   : > { %v2406_v14 = vpack.c.bf16 %v601_v13, %v601_v13 }
  0xef   : > { %775 = vrot.lane.b32.xlu2 %v2406_v14, %s2106_s6  ;;  %663 = vrot.lane.b32.xlu1 %v2406_v14, %s2107_s17 }
  0xf0   : > { %607 = vrot.lane.b32.xlu0 %v2406_v14, %s2108_s23 }
  0xf2   : > { %v602_v15 = vpop.f32.mrf.mxu0 }
  0xf3   : > { %v603_v16 = vadd.f32 %v1805_v11, %v602_v15 }
  0xf5   : > { %v2414_v17 = vpack.c.bf16 %v603_v16, %v603_v16 }
  0xf7   : > { %721 = vrot.lane.b32.xlu2 %v2406_v14, %s2109_s21  ;;  %777 = vrot.lane.b32.xlu1 %v2406_v14, %s2110_s28 }
  0xf8   : > { %665 = vrot.lane.b32.xlu0 %v2406_v14, %s2111_s2 }
  0xff   : > { %904 = vrot.lane.b32.xlu2 %v2414_v17, %s2107_s17  ;;  %719 = vrot.lane.b32.xlu1 %v2406_v14, %s2112_s22 }
 0x100   : > { %906 = vrot.lane.b32.xlu0 %v2414_v17, %s2111_s2 }
 0x107   : > { %1016 = vrot.lane.b32.xlu2 %v2414_v17, %s2106_s6  ;;  %1018 = vrot.lane.b32.xlu1 %v2414_v17, %s2110_s28 }
 0x108   : > { %850 = vrot.lane.b32.xlu0 %v2414_v17, %s2108_s23 }
 0x10f   : > { %960 = vrot.lane.b32.xlu1 %v2414_v17, %s2112_s22 }
 0x110   : > { %962 = vrot.lane.b32.xlu0 %v2414_v17, %s2109_s21 }
 0x117   : > { %753 = vrot.lane.b32.xlu1 %v2406_v14, %s2113_s30 }
 0x118   : > { %640 = vrot.lane.b32.xlu0 %v2406_v14, %s2114_s14 }
 0x120   : > { %697 = vrot.lane.b32.xlu0 %v2406_v14, %s2115_s12 }
 0x149   : > { %v776_v18 = vpop.permute.xlu2 %775 }
 0x151   : > { %v722_v19 = vpop.permute.xlu2 %721 }
 0x152   : > { %v727_v20 = vsel %vm609_vm2, %v722_v19, 0 }
 0x153   : > { %736 = vmatpush.bf16.xpose.msrb.mxu0 %v727_v20 }
 0x159   : > { %v905_v42 = vpop.permute.xlu2 %904 }
 0x161   : > { %v664_v21 = vpop.permute.xlu1 %663  ;;  %v1017_v45 = vpop.permute.xlu2 %1016 }
 0x162   : > { %v608_v22 = vpop.permute.xlu0 %607 }
 0x163   : > { %v614_v23 = vsel %vm609_vm2, %v608_v22, 0 }
 0x164   : > { %623 = vmatpush.bf16.xpose.msra.mxu1 %v614_v23 }
 0x169   : > { %v778_v24 = vpop.permute.xlu1 %777 }
 0x16a   : > { %v666_v25 = vpop.permute.xlu0 %665  ;;  %v783_v26 = vsel %vm609_vm2, %v778_v24, 0 }
 0x16b   : > { %1575 = vmatmul.msk.bf16.vlgmr.msra.gmra.mxu1 %vm609_vm2, %v2406_v14  ;;  %v671_v27 = vsel %vm609_vm2, %v666_v25, 0 }
 0x16c   : > { %680 = vmatpush.bf16.xpose.msra.mxu3 %v671_v27 }
 0x171   : > { %v720_v28 = vpop.permute.xlu1 %719 }
 0x172   : > { %v907_v29 = vpop.permute.xlu0 %906  ;;  %1579 = vmatmul.msk.bf16.vlgmr.msrb.gmra.mxu0 %vm609_vm2, %v720_v28 }
 0x173   : > { %v912_v30 = vsel %vm609_vm2, %v907_v29, 0  ;;  %1577 = vmatmul.msk.bf16.vlgmr.msra.gmra.mxu3 %vm609_vm2, %v664_v21 }
 0x174   : > { %792 = vmatpush.bf16.xpose.msrb.mxu3 %v783_v26 }
 0x179   : > { %v1019_v31 = vpop.permute.xlu1 %1018 }
 0x17a   : > { %v851_v32 = vpop.permute.xlu0 %850  ;;  %v1024_v36 = vsel %vm609_vm2, %v1019_v31, 0 }
 0x17b   : > { %v856_v33 = vsel %vm609_vm2, %v851_v32, 0 }
 0x17c   : > { %921 = vmatpush.bf16.xpose.msra.mxu3 %v912_v30  ;;  %865 = vmatpush.bf16.xpose.msra.mxu0 %v856_v33 }
 0x181   : > { %v961_v34 = vpop.permute.xlu1 %960 }
 0x182   : > { %v963_v35 = vpop.permute.xlu0 %962 }
 0x183   : > { %v968_v37 = vsel %vm609_vm2, %v963_v35, 0  ;;  %1581 = vmatmul.msk.bf16.vlgmr.msrb.gmra.mxu3 %vm609_vm2, %v776_v18  ;;  %1583 = vmatmul.msk.bf16.vlgmr.msra.gmra.mxu0 %vm609_vm2, %v2414_v17 }
 0x184   : > { %1033 = vmatpush.bf16.xpose.msrb.mxu3 %v1024_v36  ;;  %977 = vmatpush.bf16.xpose.msrb.mxu0 %v968_v37 }
 0x189   : > { %v754_v38 = vpop.permute.xlu1 %753 }
 0x18a   : > { %v641_v39 = vpop.permute.xlu0 %640  ;;  %v759_v40 = vsel %vm645_vm3, %v754_v38, 0 }
 0x18b   : > { %v647_v41 = vsel %vm645_vm3, %v641_v39, 0  ;;  %768 = vmatpush.bf16.msrb.mxu1 %v759_v40 }
 0x18c   : > { %656 = vmatpush.bf16.msra.mxu2 %v647_v41 }
 0x192   : > { %v698_v43 = vpop.permute.xlu0 %697 }
 0x193   : > { %1585 = vmatmul.msk.bf16.vlgmr.msra.gmra.mxu3 %vm609_vm2, %v905_v42  ;;  %1587 = vmatmul.msk.bf16.vlgmr.msrb.gmra.mxu0 %vm609_vm2, %v961_v34  ;;  %v703_v44 = vsel %vm645_vm3, %v698_v43, 0 }
 0x194   : > { %712 = vmatpush.bf16.msrb.mxu2 %v703_v44 }
 0x1a3   : > { %1589 = vmatmul.msk.bf16.vlgmr.msrb.gmra.mxu3 %vm609_vm2, %v1017_v45 }
 0x1e8   : > { %v625_v46 = vpop.f32.mrf.mxu1 }
 0x1e9   : > { %v629_v47 = vsel %vm609_vm2, %v625_v46, -inf }
 0x1ea   : > { %630 = vmax.xlane.f32.xlu2 %v629_v47 }
 0x1ef   : > { %v2452_v48 = vpop.f32.mrf.mxu0 }
 0x1f0   : > { %v627_v49 = vpop.f32.mrf.mxu1  ;;  %v742_v1 = vsel %vm609_vm2, %v2452_v48, -inf }
 0x1f6   : > { %v682_v50 = vpop.f32.mrf.mxu3 }
 0x1f7   : > { %v740_v51 = vpop.f32.mrf.mxu0  ;;  %v686_v52 = vsel %vm609_vm2, %v682_v50, -inf }
 0x1f8   : > { %687 = vmax.xlane.f32.xlu1 %v686_v52 }
 0x1fe   : > { %v684_v53 = vpop.f32.mrf.mxu3 }
 0x200   : > { %v2455_v54 = vpop.f32.mrf.mxu0 }
 0x201   : > { %v871_v3 = vsel %vm609_vm2, %v2455_v54, -inf }
 0x202   : > { %809 = vrot.lane.b32.xlu2 %v2406_v14, %s2116_s11 }
 0x206   : > { %v794_v55 = vpop.f32.mrf.mxu3 }
 0x207   : > { %v798_v56 = vsel %vm609_vm2, %v794_v55, -inf }
 0x208   : > { %799 = vmax.xlane.f32.xlu0 %v798_v56  ;;  %v869_v57 = vpop.f32.mrf.mxu0 }
 0x20e   : > { %v796_v58 = vpop.f32.mrf.mxu3 }
 0x210   : > { %v2459_v59 = vpop.f32.mrf.mxu0 }
 0x211   : > { %882 = vrot.lane.b32.xlu1 %v2414_v17, %s2114_s14  ;;  %v983_v5 = vsel %vm609_vm2, %v2459_v59, -inf }
 0x216   : > { %v923_v60 = vpop.f32.mrf.mxu3 }
 0x217   : > { %v927_v61 = vsel %vm609_vm2, %v923_v60, -inf }
 0x218   : > { %928 = vmax.xlane.f32.xlu0 %v927_v61  ;;  %v981_v62 = vpop.f32.mrf.mxu0 }
 0x21e   : > { %v925_v63 = vpop.f32.mrf.mxu3 }
 0x226   : > { %v2464_v0 = vpop.f32.mrf.mxu3 }
 0x227   : > { %v1039_v4 = vsel %vm609_vm2, %v2464_v0, -inf }
 0x22b   : > { %743 = vmax.xlane.f32.xlu2 %v742_v1 }
 0x22c   : > { %938 = vrot.lane.b32.xlu0 %v2414_v17, %s2115_s12 }
 0x22e   : > { %v1037_v2 = vpop.f32.mrf.mxu3 }
 0x233   : > { %872 = vmax.xlane.f32.xlu2 %v871_v3 }
 0x23b   : > { %1040 = vmax.xlane.f32.xlu1 %v1039_v4 }
 0x24b   : > { %1050 = vrot.lane.b32.xlu2 %v2414_v17, %s2116_s11 }
 0x254   : > { %994 = vrot.lane.b32.xlu1 %v2414_v17, %s2113_s30 }
 0x256   : > { %984 = vmax.xlane.f32.xlu0 %v983_v5 }
 0x25d   : > { %v631_v6 = vpop.xlane.xlu2 %630 }
 0x25e   : > { %v632_v7 = vsub.f32 %v625_v46, %v631_v6 }
 0x260   : > { %v633_v10 = vmul.f32 1.442695, %v632_v7 }
 0x262   : > { %1807 = vpow2.f32 %v633_v10 }
 0x265   : > { %v810_v12 = vpop.permute.xlu2 %809 }
 0x266   : > { %v815_v14 = vsel %vm645_vm3, %v810_v12, 0 }
 0x268   : > { %v2479_v11 = vpop.eup %1807 }
 0x269   : > { %v639_v13 = vpack.c.bf16 %v2479_v11, %v2479_v11 }
 0x26b   : > { %v688_v15 = vpop.xlane.xlu1 %687  ;;  %1576 = vmatmul.msk.bf16.vlgmr.msra.gmra.mxu2 %vm609_vm2, %v639_v13 }
 0x26c   : > { %v689_v16 = vsub.f32 %v682_v50, %v688_v15  ;;  %824 = vmatpush.bf16.msra.mxu2 %v815_v14 }
 0x26e   : > { %v690_v17 = vmul.f32 1.442695, %v689_v16 }
 0x270   : > { %1809 = vpow2.f32 %v690_v17 }
 0x276   : > { %v1810_v18 = vpop.eup %1809 }
 0x277   : > { %v692_v19 = vsel %vm609_vm2, %v1810_v18, 0.0  ;;  %v696_v20 = vpack.c.bf16 %v1810_v18, %v1810_v18 }
 0x278   : > { %693 = vadd.xlane.f32.xlu0 %v692_v19 }
 0x27b   : > { %1578 = vmatmul.msk.bf16.vlgmr.msrb.gmra.mxu2 %vm609_vm2, %v696_v20  ;;  %v800_v21 = vpop.xlane.xlu0 %799 }
 0x27c   : > { %v801_v22 = vsub.f32 %v794_v55, %v800_v21  ;;  %v635_v55 = vsel %vm609_vm2, %v2479_v11, 0.0 }
 0x27e   : > { %v802_v23 = vmul.f32 1.442695, %v801_v22 }
 0x280   : > { %1811 = vpow2.f32 %v802_v23 }
 0x283   : > { %v883_v24 = vpop.permute.xlu1 %882 }
 0x284   : > { %v888_v25 = vsel %vm645_vm3, %v883_v24, 0 }
 0x285   : > { %897 = vmatpush.bf16.msra.mxu1 %v888_v25 }
 0x286   : > { %v1812_v26 = vpop.eup %1811 }
 0x287   : > { %v808_v27 = vpack.c.bf16 %v1812_v26, %v1812_v26  ;;  %v804_v50 = vsel %vm609_vm2, %v1812_v26, 0.0 }
 0x28b   : > { %1582 = vmatmul.msk.bf16.vlgmr.msra.gmra.mxu2 %vm609_vm2, %v808_v27  ;;  %v929_v28 = vpop.xlane.xlu0 %928 }
 0x28c   : > { %v930_v29 = vsub.f32 %v923_v60, %v929_v28 }
 0x28e   : > { %v931_v30 = vmul.f32 1.442695, %v930_v29 }
 0x290   : > { %1813 = vpow2.f32 %v931_v30 }
 0x296   : > { %v1814_v31 = vpop.eup %1813 }
 0x297   : > { %v933_v32 = vsel %vm609_vm2, %v1814_v31, 0.0  ;;  %v937_v37 = vpack.c.bf16 %v1814_v31, %v1814_v31 }
 0x298   : > { %934 = vadd.xlane.f32.xlu2 %v933_v32 }
 0x29e   : > { %v744_v33 = vpop.xlane.xlu2 %743  ;;  %v939_v34 = vpop.permute.xlu0 %938 }
 0x29f   : > { %v745_v35 = vsub.f32 %v2452_v48, %v744_v33  ;;  %v944_v36 = vsel %vm645_vm3, %v939_v34, 0 }
 0x2a0   : > { %953 = vmatpush.bf16.msrb.mxu2 %v944_v36 }
 0x2a1   : > { %v746_v38 = vmul.f32 1.442695, %v745_v35 }
 0x2a3   : > { %1815 = vpow2.f32 %v746_v38  ;;  %1586 = vmatmul.msk.bf16.vlgmr.msrb.gmra.mxu2 %vm609_vm2, %v937_v37 }
 0x2a6   : > { %v873_v39 = vpop.xlane.xlu2 %872 }
 0x2a7   : > { %v874_v41 = vsub.f32 %v2455_v54, %v873_v39 }
 0x2a9   : > { %v1816_v40 = vpop.eup %1815  ;;  %v875_v44 = vmul.f32 1.442695, %v874_v41 }
 0x2aa   : > { %v748_v42 = vsel %vm609_vm2, %v1816_v40, 0.0  ;;  %v752_v43 = vpack.c.bf16 %v1816_v40, %v1816_v40 }
 0x2ab   : > { %749 = vadd.xlane.f32.xlu0 %v748_v42  ;;  %1817 = vpow2.f32 %v875_v44  ;;  %v1639_v44 = vld [vmem:[%s2382_s8 + $0x8] sm:$0xff] }
 0x2ac   : > { %1580 = vmatmul.msk.bf16.vlgmr.msrb.gmra.mxu1 %vm609_vm2, %v752_v43  ;;  %1115 = vmatpush.bf16.msra.mxu0 %v1639_v44 }
 0x2ae   : > { %v1041_v45 = vpop.xlane.xlu1 %1040  ;;  %v1051_v46 = vpop.permute.xlu2 %1050 }
 0x2af   : > { %v1042_v47 = vsub.f32 %v2464_v0, %v1041_v45  ;;  %v1056_v48 = vsel %vm645_vm3, %v1051_v46, 0  ;;  %v1638_v45 = vld [vmem:[%s2382_s8] sm:$0xff] }
 0x2b0   : > { %1065 = vmatpush.bf16.msra.mxu2 %v1056_v48  ;;  %1116 = vmatpush.bf16.msra.mxu0 %v1638_v45 }
 0x2b1   : > { %v1043_v49 = vmul.f32 1.442695, %v1042_v47  ;;  %v1818_v51 = vpop.eup %1817 }
 0x2b2   : > { %v881_v53 = vpack.c.bf16 %v1818_v51, %v1818_v51  ;;  %v877_v62 = vsel %vm609_vm2, %v1818_v51, 0.0 }
 0x2b3   : > { %1819 = vpow2.f32 %v1043_v49  ;;  %805 = vadd.xlane.f32.xlu0 %v804_v50 }
 0x2b9   : > { %v1820_v52 = vpop.eup %1819 }
 0x2ba   : > { %v1049_v54 = vpack.c.bf16 %v1820_v52, %v1820_v52  ;;  %v1045_v56 = vsel %vm609_vm2, %v1820_v52, 0.0 }
 0x2bb   : > { %636 = vadd.xlane.f32.xlu0 %v635_v55 }
 0x2bc   : > { %1584 = vmatmul.msk.bf16.vlgmr.msra.gmra.mxu1 %vm609_vm2, %v881_v53  ;;  %1590 = vmatmul.msk.bf16.vlgmr.msra.gmra.mxu2 %vm609_vm2, %v1049_v54 }
 0x2c3   : > { %1046 = vadd.xlane.f32.xlu0 %v1045_v56 }
 0x2c6   : > { %v995_v57 = vpop.permute.xlu1 %994 }
 0x2c7   : > { %v1000_v58 = vsel %vm645_vm3, %v995_v57, 0 }
 0x2c8   : > { %1009 = vmatpush.bf16.msrb.mxu1 %v1000_v58 }
 0x2c9   : > { %v985_v60 = vpop.xlane.xlu0 %984 }
 0x2ca   : > { %v986_v61 = vsub.f32 %v2459_v59, %v985_v60 }
 0x2cb   : > { %878 = vadd.xlane.f32.xlu0 %v877_v62 }
 0x2cc   : > { %v987_v63 = vmul.f32 1.442695, %v986_v61 }
 0x2ce   : > { %1821 = vpow2.f32 %v987_v63 }
 0x2d4   : > { %v1822_v0 = vpop.eup %1821 }
 0x2d5   : > { %v993_v1 = vpack.c.bf16 %v1822_v0, %v1822_v0  ;;  %v989_v2 = vsel %vm609_vm2, %v1822_v0, 0.0 }
 0x2d6   : > { %990 = vadd.xlane.f32.xlu1 %v989_v2  ;;  %v2516_v2 = vld [vmem:[%s2355_s25] sm:$0xff] }
 0x2d7   : > { %1588 = vmatmul.msk.bf16.vlgmr.msrb.gmra.mxu1 %vm609_vm2, %v993_v1 }
 0x2eb   : > { %v694_v10 = vpop.xlane.xlu0 %693 }
 0x2ec   : > { %1823 = vrcp.f32 %v694_v10 }
 0x2ee   : > { %v658_v3 = vpop.f32.mrf.mxu2 }
 0x2f2   : > { %v1824_v13 = vpop.eup %1823 }
 0x2f6   : > { %v660_v4 = vpop.f32.mrf.mxu2 }
 0x2fe   : > { %v714_v5 = vpop.f32.mrf.mxu2 }
 0x2ff   : > { %v718_v17 = vmul.f32 %v1824_v13, %v714_v5  ;;  %v2120_v13 = vmov 32.0  }
 0x306   : > { %v716_v6 = vpop.f32.mrf.mxu2 }
 0x30b   : > { %v935_v59 = vpop.xlane.xlu2 %934 }
 0x30c   : > { %1825 = vrcp.f32 %v935_v59 }
 0x30e   : > { %v826_v7 = vpop.f32.mrf.mxu2 }
 0x312   : > { %v1826_v14 = vpop.eup %1825 }
 0x316   : > { %v828_v11 = vpop.f32.mrf.mxu2 }
 0x31e   : > { %v750_v12 = vpop.xlane.xlu0 %749 }
 0x326   : > { %v955_v15 = vpop.f32.mrf.mxu2  ;;  %v806_v16 = vpop.xlane.xlu0 %805 }
 0x327   : > { %v959_v18 = vmul.f32 %v1826_v14, %v955_v15 }
 0x329   : > { %v1790_v19 = vpack.i.bf16 %v959_v18, %v718_v17  ;;  %v770_v20 = vpop.f32.mrf.mxu1 }
 0x32b   : > { %1791 = vrot.lane.b32.xlu2 %v1790_v19, %s2117_s24 }
 0x32e   : > { %v957_v21 = vpop.f32.mrf.mxu2  ;;  %v637_v22 = vpop.xlane.xlu0 %636 }
 0x32f   : > { %1827 = vrcp.f32 %v637_v22 }
 0x330   : > { %1829 = vrcp.f32 %v806_v16 }
 0x331   : > { %v772_v23 = vpop.f32.mrf.mxu1 }
 0x335   : > { %v1828_v24 = vpop.eup %1827 }
 0x336   : > { %v662_v25 = vmul.f32 %v1828_v24, %v658_v3  ;;  %v1047_v26 = vpop.xlane.xlu0 %1046  ;;  %v1830_v28 = vpop.eup %1829  ;;  %v1093_v3 = vperm.slane %v2516_v2, 0 }
 0x337   : > { %1831 = vrcp.f32 %v1047_v26  ;;  %v830_v31 = vmul.f32 %v1830_v28, %v826_v7  ;;  %v1641_v28 = vld [vmem:[%s2358_s20 + $0x8] sm:$0xff] }
 0x338   : > { %1833 = vrcp.f32 %v750_v12  ;;  %1212 = vmatpush.bf16.msra.mxu1 %v1641_v28 }
 0x339   : > { %v899_v27 = vpop.f32.mrf.mxu1 }
 0x33d   : > { %v1832_v29 = vpop.eup %1831 }
 0x33e   : > { %v1834_v37 = vpop.eup %1833  ;;  %v879_v46 = vpop.xlane.xlu0 %878 }
 0x33f   : > { %v1067_v30 = vpop.f32.mrf.mxu2  ;;  %v774_v40 = vmul.f32 %v1834_v37, %v770_v20 }
 0x340   : > { %v1071_v32 = vmul.f32 %v1832_v29, %v1067_v30 }
 0x341   : > { %v901_v33 = vpop.f32.mrf.mxu1 }
 0x342   : > { %v1800_v34 = vpack.i.bf16 %v1071_v32, %v830_v31  ;;  %v1640_v32 = vld [vmem:[%s2358_s20] sm:$0xff] }
 0x343   : > { %1213 = vmatpush.bf16.msra.mxu1 %v1640_v32 }
 0x344   : > { %1801 = vrot.lane.b32.xlu1 %v1800_v34, %s2118_s19 }
 0x347   : > { %v1069_v35 = vpop.f32.mrf.mxu2 }
 0x349   : > { %v991_v36 = vpop.xlane.xlu1 %990 }
 0x34a   : > { %1835 = vrcp.f32 %v991_v36 }
 0x34b   : > { %1837 = vrcp.f32 %v879_v46 }
 0x34c   : > { %1839 = vrcp.f32 %v2120_v13 }
 0x350   : > { %v1836_v38 = vpop.eup %1835 }
 0x351   : > { %v1838_v48 = vpop.eup %1837 }
 0x352   : > { %v903_v52 = vmul.f32 %v1838_v48, %v899_v27  ;;  %v1840_v14 = vpop.eup %1839  ;;  %v1176_v48 = vperm.slane %v2516_v2, 1 }
 0x353   : > { %v1132_v15 = vmul.f32 32.0, %v1840_v14  ;;  %vm1136_vm6 = vweird.f32 %v1840_v14 }
 0x354   : > { %v1011_v39 = vpop.f32.mrf.mxu1 }
 0x355   : > { %v1015_v41 = vmul.f32 %v1836_v38, %v1011_v39  ;;  %v1133_v16 = vsub.f32 1.0, %v1132_v15 }
 0x357   : > { %v1795_v42 = vpack.i.bf16 %v1015_v41, %v774_v40  ;;  %v1134_v17 = vmul.f32 %v1840_v14, %v1133_v16 }
 0x359   : > { %1796 = vrot.lane.b32.xlu0 %v1795_v42, %s2119_s1  ;;  %v1135_v18 = vadd.f32 %v1840_v14, %v1134_v17 }
 0x35c   : > { %v1013_v43 = vpop.f32.mrf.mxu1 }
 0x385   : > { %v1792_v47 = vpop.permute.xlu2 %1791 }
 0x386   : > { %v1794_v49 = vunpack.i.h.bf16 %v1792_v47  ;;  %v1793_v50 = vunpack.i.l.bf16 %v1792_v47 }
 0x388   : > { %v843_v56 = vsel %vm609_vm2, %v662_v25, %v1793_v50  ;;  %v1084_v57 = vsel %vm609_vm2, %v903_v52, %v1794_v49  ;;  %v1179_v52 = vperm.slane %v2516_v2, 2 }
 0x3b6   : > { %v1802_v51 = vpop.permute.xlu1 %1801 }
 0x3b7   : > { %v1804_v58 = vunpack.i.h.bf16 %v1802_v51  ;;  %v1803_v60 = vunpack.i.l.bf16 %v1802_v51 }
 0x3cb   : > { %v1797_v53 = vpop.permute.xlu0 %1796 }
 0x3cc   : > { %v1799_v54 = vunpack.i.h.bf16 %v1797_v53  ;;  %v1798_v55 = vunpack.i.l.bf16 %v1797_v53 }
 0x3ce   : > { %v1085_v61 = vsel %vm844_vm4, %v1084_v57, %v1799_v54  ;;  %v845_v62 = vsel %vm844_vm4, %v843_v56, %v1798_v55 }
 0x3cf   : > { %v1086_v63 = vsel %vm846_vm5, %v1085_v61, %v1804_v58  ;;  %v847_v0 = vsel %vm846_vm5, %v845_v62, %v1803_v60  ;;  %v1645_v60 = vld [vmem:[%s2392_s3 + $0x18] sm:$0xff]  ;;  %v1644_v61 = vld [vmem:[%s2392_s3 + $0x10] sm:$0xff]  ;;  %v1643_v62 = vld [vmem:[%s2392_s3 + $0x8] sm:$0xff] }
 0x3d0   : > { %v1088_v1 = vpack.c.bf16 %v1086_v63, %v847_v0  ;;  %1264 = vmatpush.bf16.msra.mxu3 %v1645_v60  ;;  %v1642_v63 = vld [vmem:[%s2392_s3] sm:$0xff] }
 0x3d2   : > { %1599 = vmatmul.msk.bf16.vlgmr.msra.gmra.mxu0 %vm587_vm1, %v1088_v1  ;;  %v1806_v1 = vld [vmem:[%s543_s7] ss:$0 sm:$0xff] }
 0x3d4   : > { %1265 = vmatpush.bf16.msra.mxu3 %v1644_v61 }
 0x3d8   : > { %1266 = vmatpush.bf16.msra.mxu3 %v1643_v62 }
 0x3dc   : > { %1267 = vmatpush.bf16.msra.mxu3 %v1642_v63 }
 0x44f   : > { %v1118_v4 = vpop.f32.mrf.mxu0 }
 0x450   : > { %v1119_v5 = vadd.f32 %v1118_v4, %v1093_v3 }
 0x452   : > { %v1123_v6 = vadd.f32 %v1119_v5, %v2397_v8  ;;  %v2523_v8 = vsel %vm1136_vm6, %v1840_v14, %v1135_v18 }
 0x454   : > { %v1125_v7 = vsel %vm587_vm1, %v1123_v6, 0.0 }
 0x455   : > { %1126 = vadd.xlane.f32.xlu2 %v1125_v7 }
 0x457   : > { %v1120_v10 = vpop.f32.mrf.mxu0 }
 0x458   : > { %v1121_v11 = vadd.f32 %v1120_v10, %v1093_v3 }
 0x45a   : > { %v1124_v59 = vadd.f32 %v1121_v11, %v2399_v9  ;;  %v1231_v11 = vperm.slane %v2516_v2, 3 }
 0x45c   : > { %v1128_v12 = vsel %vm587_vm1, %v1124_v59, 0.0 }
 0x45d   : > { %1129 = vadd.xlane.f32.xlu0 %v1128_v12 }
 0x4c8   : > { %v1127_v19 = vpop.xlane.xlu2 %1126 }
 0x4c9   : > { %v1138_v20 = vmul.f32 %v2523_v8, %v1127_v19 }
 0x4cb   : > { %v1140_v21 = vsub.f32 %v1123_v6, %v1138_v20 }
 0x4cd   : > { %v1142_v9 = vmul.f32 %v1140_v21, %v1140_v21 }
 0x4cf   : > { %v1144_v22 = vsel %vm587_vm1, %v1142_v9, 0.0 }
 0x4d0   : > { %v1130_v23 = vpop.xlane.xlu0 %1129  ;;  %1145 = vadd.xlane.f32.xlu1 %v1144_v22 }
 0x4d1   : > { %v1139_v24 = vmul.f32 %v2523_v8, %v1130_v23 }
 0x4d3   : > { %v1141_v25 = vsub.f32 %v1124_v59, %v1139_v24 }
 0x4d5   : > { %v1143_v26 = vmul.f32 %v1141_v25, %v1141_v25 }
 0x4d7   : > { %v1147_v27 = vsel %vm587_vm1, %v1143_v26, 0.0 }
 0x4d8   : > { %1148 = vadd.xlane.f32.xlu2 %v1147_v27 }
 0x543   : > { %v1146_v29 = vpop.xlane.xlu1 %1145 }
 0x544   : > { %v1150_v30 = vmul.f32 %v1146_v29, %v2523_v8 }
 0x546   : > { %v1152_v31 = vadd.f32 1e-05, %v1150_v30 }
 0x548   : > { %1841 = vrsqrt.f32 %v1152_v31  ;;  %vm1160_vm8 = vweird.f32 %v1152_v31 }
 0x54b   : > { %v1149_v33 = vpop.xlane.xlu2 %1148 }
 0x54c   : > { %v1151_v34 = vmul.f32 %v1149_v33, %v2523_v8 }
 0x54e   : > { %v1842_v35 = vpop.eup %1841  ;;  %v1153_v36 = vadd.f32 1e-05, %v1151_v34 }
 0x54f   : > { %v1155_v37 = vmul.f32 %v1842_v35, %v1152_v31  ;;  %vm1161_vm7 = vweird.f32 %v1842_v35 }
 0x550   : > { %1843 = vrsqrt.f32 %v1153_v36  ;;  %vm1162_vm9 = vmor %vm1160_vm8, %vm1161_vm7  ;;  %vm1170_vm11 = vweird.f32 %v1153_v36 }
 0x551   : > { %v1156_v38 = vmul.f32 %v1842_v35, %v1155_v37 }
 0x553   : > { %v1157_v39 = vmul.f32 0.5, %v1156_v38 }
 0x555   : > { %v1158_v40 = vsub.f32 1.5, %v1157_v39 }
 0x556   : > { %v1844_v41 = vpop.eup %1843 }
 0x557   : > { %v1159_v42 = vmul.f32 %v1842_v35, %v1158_v40  ;;  %v1165_v43 = vmul.f32 %v1844_v41, %v1153_v36  ;;  %vm1171_vm10 = vweird.f32 %v1844_v41 }
 0x558   : > { %vm1172_vm12 = vmor %vm1170_vm11, %vm1171_vm10 }
 0x559   : > { %v1166_v44 = vmul.f32 %v1844_v41, %v1165_v43  ;;  %v1163_v45 = vsel %vm1162_vm9, %v1842_v35, %v1159_v42  ;;  %v1320_v42 = vperm.slane %v2516_v2, 4 }
 0x55a   : > { %v1174_v49 = vmul.f32 %v1163_v45, %v1140_v21  ;;  %v1323_v45 = vperm.slane %v2516_v2, 5 }
 0x55b   : > { %v1167_v46 = vmul.f32 0.5, %v1166_v44 }
 0x55c   : > { %v1177_v53 = vmul.f32 %v1176_v48, %v1174_v49 }
 0x55d   : > { %v1168_v47 = vsub.f32 1.5, %v1167_v46 }
 0x55e   : > { %v1180_v56 = vadd.f32 %v1179_v52, %v1177_v53 }
 0x55f   : > { %v1169_v50 = vmul.f32 %v1844_v41, %v1168_v47 }
 0x561   : > { %v1173_v51 = vsel %vm1172_vm12, %v1844_v41, %v1169_v50 }
 0x562   : > { %v1175_v54 = vmul.f32 %v1173_v51, %v1141_v25 }
 0x564   : > { %v1178_v55 = vmul.f32 %v1176_v48, %v1175_v54 }
 0x566   : > { %v1181_v57 = vadd.f32 %v1179_v52, %v1178_v55 }
 0x568   : > { %v1182_v58 = vpack.c.bf16 %v1181_v57, %v1180_v56 }
 0x56a   : > { %1608 = vmatmul.msk.bf16.vlgmr.msra.gmra.mxu1 %vm587_vm1, %v1182_v58 }
 0x5e7   : > { %v1215_v0 = vpop.f32.mrf.mxu1 }
 0x5e8   : > { %v1216_v3 = vadd.f32 %v1806_v1, %v1215_v0 }
 0x5ea   : > { %v1220_v6 = vmax.f32 %v1216_v3, 0.0 }
 0x5ef   : > { %v1217_v4 = vpop.f32.mrf.mxu1 }
 0x5f0   : > { %v1218_v5 = vadd.f32 %v1806_v1, %v1217_v4 }
 0x5f2   : > { %v1221_v7 = vmax.f32 %v1218_v5, 0.0 }
 0x5f4   : > { %v1222_v10 = vpack.c.bf16 %v1221_v7, %v1220_v6 }
 0x5f6   : > { %1625 = vmatmul.msk.bf16.vlgmr.msra.gmra.mxu3 %vm1256_vm13, %v1222_v10 }
 0x679   : > { %v1269_v59 = vpop.f32.mrf.mxu3 }
 0x67a   : > { %v1270_v12 = vadd.f32 %v1269_v59, %v1231_v11 }
 0x67c   : > { %v1274_v13 = vadd.f32 %v1270_v12, %v1180_v56 }
 0x67e   : > { %v1276_v14 = vsel %vm587_vm1, %v1274_v13, 0.0 }
 0x67f   : > { %1277 = vadd.xlane.f32.xlu0 %v1276_v14 }
 0x681   : > { %v1271_v15 = vpop.f32.mrf.mxu3 }
 0x682   : > { %v1272_v16 = vadd.f32 %v1271_v15, %v1231_v11 }
 0x684   : > { %v1275_v17 = vadd.f32 %v1272_v16, %v1181_v57 }
 0x686   : > { %v1279_v18 = vsel %vm587_vm1, %v1275_v17, 0.0 }
 0x687   : > { %1280 = vadd.xlane.f32.xlu2 %v1279_v18 }
 0x6f2   : > { %v1278_v19 = vpop.xlane.xlu0 %1277 }
 0x6f3   : > { %v1282_v20 = vmul.f32 %v1278_v19, %v2523_v8 }
 0x6f5   : > { %v1284_v21 = vsub.f32 %v1274_v13, %v1282_v20 }
 0x6f7   : > { %v1286_v9 = vmul.f32 %v1284_v21, %v1284_v21 }
 0x6f9   : > { %v1288_v22 = vsel %vm587_vm1, %v1286_v9, 0.0 }
 0x6fa   : > { %v1281_v23 = vpop.xlane.xlu2 %1280  ;;  %1289 = vadd.xlane.f32.xlu0 %v1288_v22 }
 0x6fb   : > { %v1283_v24 = vmul.f32 %v1281_v23, %v2523_v8 }
 0x6fd   : > { %v1285_v25 = vsub.f32 %v1275_v17, %v1283_v24 }
 0x6ff   : > { %v1287_v26 = vmul.f32 %v1285_v25, %v1285_v25 }
 0x701   : > { %v1291_v27 = vsel %vm587_vm1, %v1287_v26, 0.0 }
 0x702   : > { %1292 = vadd.xlane.f32.xlu1 %v1291_v27 }
 0x76d   : > { %v1290_v28 = vpop.xlane.xlu0 %1289 }
 0x76e   : > { %v1294_v29 = vmul.f32 %v1290_v28, %v2523_v8 }
 0x770   : > { %v1296_v30 = vadd.f32 1e-05, %v1294_v29 }
 0x772   : > { %1845 = vrsqrt.f32 %v1296_v30  ;;  %vm1304_vm15 = vweird.f32 %v1296_v30 }
 0x775   : > { %v1293_v31 = vpop.xlane.xlu1 %1292 }
 0x776   : > { %v1295_v32 = vmul.f32 %v1293_v31, %v2523_v8 }
 0x778   : > { %v1846_v33 = vpop.eup %1845  ;;  %v1297_v34 = vadd.f32 1e-05, %v1295_v32 }
 0x779   : > { %v1299_v35 = vmul.f32 %v1846_v33, %v1296_v30  ;;  %vm1305_vm14 = vweird.f32 %v1846_v33 }
 0x77a   : > { %1847 = vrsqrt.f32 %v1297_v34  ;;  %vm1306_vm0 = vmor %vm1304_vm15, %vm1305_vm14  ;;  %vm1314_vm3 = vweird.f32 %v1297_v34 }
 0x77b   : > { %v1300_v36 = vmul.f32 %v1846_v33, %v1299_v35 }
 0x77d   : > { %v1301_v37 = vmul.f32 0.5, %v1300_v36 }
 0x77f   : > { %v1302_v38 = vsub.f32 1.5, %v1301_v37 }
 0x780   : > { %v1848_v39 = vpop.eup %1847 }
 0x781   : > { %v1303_v40 = vmul.f32 %v1846_v33, %v1302_v38  ;;  %v1309_v41 = vmul.f32 %v1848_v39, %v1297_v34  ;;  %vm1315_vm2 = vweird.f32 %v1848_v39 }
 0x782   : > { %vm1316_vm4 = vmor %vm1314_vm3, %vm1315_vm2 }
 0x783   : > { %v1307_v43 = vsel %vm1306_vm0, %v1846_v33, %v1303_v40  ;;  %v1310_v44 = vmul.f32 %v1848_v39, %v1309_v41 }
 0x784   : > { %v1318_v8 = vmul.f32 %v1307_v43, %v1284_v21 }
 0x785   : > { %v1311_v46 = vmul.f32 0.5, %v1310_v44 }
 0x786   : > { %v1321_v47 = vmul.f32 %v1320_v42, %v1318_v8 }
 0x787   : > { %v1312_v48 = vsub.f32 1.5, %v1311_v46 }
 0x788   : > { %v1324_v49 = vadd.f32 %v1323_v45, %v1321_v47 }
 0x789   : > { %v1313_v50 = vmul.f32 %v1848_v39, %v1312_v48 }
 0x78a   : > { %1326 = vst.msk [vmem:[#allocation2] sm:$0xff] %vm587_vm1, %v1324_v49 }
 0x78b   : > { %v1317_v51 = vsel %vm1316_vm4, %v1848_v39, %v1313_v50 }
 0x78c   : > { %v1319_v52 = vmul.f32 %v1317_v51, %v1285_v25 }
 0x78e   : > { %v1322_v53 = vmul.f32 %v1320_v42, %v1319_v52  ;;  %1331 = sbr.rel (%p1626_p12) target bundleno = 1941 (0x795), region = 80 }
 0x790   : > { %v1325_v54 = vadd.f32 %v1323_v45, %v1322_v53 }
 0x792   : > { %1327 = vst.msk [vmem:[#allocation2 + $0x8] sm:$0xff] %vm587_vm1, %v1325_v54 }
 0x793   : > { %1332 = vst.msk [vmem:[%s2394_s27] sm:$0xff] %vm587_vm1, %v1324_v49 }
 0x794   : > { %1333 = vst.msk [vmem:[%s2394_s27 + $0x8] sm:$0xff] %vm587_vm1, %v1325_v54 }
 0x795 PF: > { %s1646_s26 = sshll.u32 %s2087_s16, 4  ;;  %s2681_s29 = sld [smem:[#allocation36_spill]] }
 0x796   : > { %s1347_s3 = sshll.u32 %s2394_s27, 4  ;;  %s2682_s5 = sand.u32 1, %s2063_s10   ;;  %s1348_s3 = int_to_ptr.vmem [resolvable:$true] %s1347_s3 }
 0x797   : > { %s1335_s6 = scalar_lea.sflag [#allocation5], %s2682_s5 }
 0x79b   : > { %s1346_s18 = scalar_lea.hbm %s2681_s29, %s1646_s26  ;;  %s1989_s16 = scalar_lea.hbm %s2681_s29, 32 }
 0x79c   : > { %s1349_s15 = sshll.u32 %s1346_s18, 4  ;;  %s1350_s15 = int_to_ptr.hbm [resolvable:$true] %s1349_s15 }
 0x79d   : > { %s1983_s17 = sshra.s32 %s1350_s15, 4  ;;  %s1984_s17 = int_to_ptr.hbm [resolvable:$true] %s1983_s17 }
 0x79e   : > { %s1985_s23 = scalar_lea.hbm %s1984_s17, 16  ;;  %p1990_p2 = scmp.lt.s32.totalorder %s1984_s17, %s2681_s29 }
 0x79f   : > { %p1986_p13 = scmp.ne.s32.totalorder %s1984_s17, %s1985_s23  ;;  %p1991_p4 = scmp.lt.s32.totalorder %s1989_s16, %s1985_s23 }
 0x7a1   : > { %p1987_p0 = pnand %p1986_p13, %p2302_p3  ;;  %p1992_p6 = por %p1991_p4, %p1990_p2 }
 0x7a3   : > { %p1988_p1 = pneg %p1987_p0 }
 0x7a5   : > { %p1993_p7 = pnand %p1992_p6, %p1988_p1 }
 0x7a7   : > { %1996 = shalt.err (!%p1993_p7)
}
 0x7a8   : > { %s2121_s27 = smov 128  }
 0x7a9   : > { %1657 = dma.vmem_to_hbm [thread:$0]  (%p2302_p3), %s1348_s3, 256, %s1350_s15, %s1335_s6, %s2121_s27, %s2121_s27, %s2117_s24  }
 0x7aa PF: > { %s2683_s30 = sld [smem:[#allocation21_spill]] }
 0x7ab   : > { %s2684_s14 = sld [smem:[#allocation16_spill]] }
 0x7b0   : > { %p1680_p8 = scmp.ge.s32.totalorder %s2683_s30, 2 }
 0x7b1   : > { %s1364_s11 = sand.u32 1, %s2684_s14  }
 0x7b2   : > { %p1674_p9 = pnand %p1680_p8, %p2307_p5  ;;  %s1365_s19 = scalar_lea.sflag [#allocation5], %s1364_s11 }
 0x7b4   : > { %p1675_p10 = pneg %p1674_p9 }
 0x7b6   : > { %2054 = dma.done.wait (%p1675_p10), %s1365_s19, 256  }
 0x7b7   : > { %2056 = vsyncadd (%p1675_p10), %s1365_s19, 4294967040  ;;  %s29_s19 = sadd.s32 1, %s2683_s30   ;;  %s2686_s1 = sld [smem:[#allocation17_spill]] }
 0x7b8   : > { %p26_p11 = scmp.ge.s32.totalorder %s29_s19, 6   ;;  %s2687_s11 = sld [smem:[#allocation25_spill]] }
 0x7b9   : > { %s2688_s24 = sld [smem:[#allocation18_spill]]  ;;  %s2694_s30 = smov %s2063_s10 }
 0x7ba   : > { %s2689_s14 = sld [smem:[#allocation24_spill]]  ;;  %s2696_s12 = smov %s2075_s13 }
 0x7bb   : > { %s2690_s15 = sld [smem:[#allocation19_spill]]  ;;  %28 = sbr.rel (!%p26_p11) target bundleno = 22 (0x16), region = 153 }
 0x7bc   : > { %s2691_s16 = sld [smem:[#allocation20_spill]] }
 0x7bd   : > { %s2692_s17 = sld [smem:[#allocation22_spill]]  ;;  %s2695_s10 = smov %s2686_s1 }
 0x7be   : > { %s2693_s18 = sld [smem:[#allocation23_spill]] }
 0x7bf   : > { %s2697_s13 = smov %s2688_s24 }
 0x7c0   :  { %1371 = vsyncpa [#allocation4], 1 }
 0x7c1   :  { %1373 = vsyncpa [#allocation4 + $0x1], 1 }
 0x7c2   :  { %1374 = vsyncpa [#allocation7], 1 }
 0x7c3   :  { %1376 = vsyncpa [#allocation7 + $0x1], 1 }
 0x7c4   :  { %1377 = vsyncpa [#allocation10], 1 }
 0x7c5   :  { %1379 = vsyncpa [#allocation10 + $0x1], 1 }
 0x7c6   :  { %1380 = vsyncpa [#allocation5], 1 }
 0x7c7   :  { %1382 = vsyncpa [#allocation5 + $0x1], 1 }

</bundles_post_ra>
